<compile_context>
chip_gen: v7x
topology: tpu7x:2x2x1
jax: 0.10.0
libtpu: 0.0.40
codegen_flags: <defaults>
</compile_context>

<pallas_src>
import functools

import jax
import jax.numpy as jnp
from jax.experimental import pallas as pl
from jax.experimental.pallas import tpu as pltpu

EPS = 1e-5                      # nn.LayerNorm default eps
MXU_DTYPE = jnp.bfloat16        # matmul-boundary dtype (f32 accumulation)


# --------------------------------------------------------------------------
# Fused kernel (one grid step == one batch element / sequence)
# --------------------------------------------------------------------------
def _layernorm(x, w, b):
    mu = jnp.mean(x, axis=-1, keepdims=True)
    var = jnp.mean((x - mu) ** 2, axis=-1, keepdims=True)
    return (x - mu) * jax.lax.rsqrt(var + EPS) * w + b


def gpt_fused_kernel(x_ref, pe_ref, nv_ref, b1_ref, bcp_ref,
                     wqkv_ref, wo_ref, w1_ref, w2_ref, wcp_ref, out_ref,
                     *, num_blocks, heads, embed, seq):
    S, E, H = seq, embed, heads
    D = E // H
    scale = E ** (-0.5)  # NOTE: scale by embedding_size, as in the torch code

    # Positional-encoding add; pe is (S, E) and shared by every grid step.
    x = x_ref[...] + pe_ref[...]                       # (S, E) f32

    # Causal additive mask, built once in-kernel and reused by every block.
    row = jax.lax.broadcasted_iota(jnp.int32, (S, S), 0)
    col = jax.lax.broadcasted_iota(jnp.int32, (S, S), 1)
    mask_bias = jnp.where(col <= row, 0.0, -1e30).astype(jnp.float32)

    for blk in range(num_blocks):
        vp = nv_ref[blk]                               # (6, E) packed vectors
        ln1w, ln1b, bo = vp[0:1, :], vp[1:2, :], vp[2:3, :]
        ln2w, ln2b, b2 = vp[3:4, :], vp[4:5, :], vp[5:6, :]
        b1 = b1_ref[blk]                               # (1, hidden)

        # ---- attention sub-block ----
        skip = x
        xn = _layernorm(x, ln1w, ln1b)                 # f32

        # Fused QKV projection: ONE (S,E)@(E,3E) dot, f32 accumulation.
        qkv = jnp.dot(xn.astype(MXU_DTYPE), wqkv_ref[blk],
                      preferred_element_type=jnp.float32)      # (S, 3E) f32
        q = qkv[:, 0 * E:1 * E] * scale                # scale folded into q
        k = qkv[:, 1 * E:2 * E]
        v = qkv[:, 2 * E:3 * E]

        # Head split via lane slices stacked on a new LEADING axis -> (H,S,D).
        qh = jnp.stack([q[:, h * D:(h + 1) * D] for h in range(H)], axis=0)
        kh = jnp.stack([k[:, h * D:(h + 1) * D] for h in range(H)], axis=0)
        vh = jnp.stack([v[:, h * D:(h + 1) * D] for h in range(H)], axis=0)

        # Heads-batched score / softmax / AV (replaces the per-head loop).
        s = jnp.einsum('hqd,hkd->hqk',
                       qh.astype(MXU_DTYPE), kh.astype(MXU_DTYPE),
                       preferred_element_type=jnp.float32)      # (H,S,S) f32
        s = s + mask_bias                               # broadcast over heads
        s = s - jnp.max(s, axis=-1, keepdims=True)
        p = jnp.exp(s)
        p = p * pl.reciprocal(jnp.sum(p, axis=-1, keepdims=True), approx=True)
        o = jnp.einsum('hqk,hkd->hqd',
                       p.astype(MXU_DTYPE), vh.astype(MXU_DTYPE),
                       preferred_element_type=jnp.float32)      # (H,S,D) f32

        # Output projection: batched per-head (D,E) slices of Wo, then a cheap
        # leading-axis sum (avoids an unaligned lane concat).
        attn = jnp.sum(
            jnp.einsum('hqd,hde->hqe', o.astype(MXU_DTYPE), wo_ref[blk],
                       preferred_element_type=jnp.float32), axis=0)  # (S,E)
        x = attn + bo + skip

        # ---- feed-forward sub-block ---- (dropout == identity at inference)
        skip = x
        xn = _layernorm(x, ln2w, ln2b)
        h1 = jnp.maximum(
            jnp.dot(xn.astype(MXU_DTYPE), w1_ref[blk],
                    preferred_element_type=jnp.float32) + b1, 0.0)
        ff = jnp.dot(h1.astype(MXU_DTYPE), w2_ref[blk],
                     preferred_element_type=jnp.float32) + b2
        x = ff + skip

    # ---- classifier head (lane-dense, padded to 128 classes) ----
    out_ref[...] = jnp.dot(x.astype(MXU_DTYPE), wcp_ref[...],
                           preferred_element_type=jnp.float32) + bcp_ref[...]


# --------------------------------------------------------------------------
# Wrapper: pack/restructure params once, launch one pallas_call (grid = batch)
# --------------------------------------------------------------------------
def gpt_forward(x, pe, blocks, wc, bc, heads):
    B, S, E = x.shape
    C = wc.shape[1]
    Cp = ((C + 127) // 128) * 128          # lane-dense padded class count
    NB = len(blocks)
    hidden = blocks[0]["w1"].shape[1]
    D = E // heads

    # ---- one-time parameter packing (plain JAX, outside the kernel) ----
    wqkv = jnp.stack([jnp.concatenate([p["wq"], p["wk"], p["wv"]], axis=1)
                      for p in blocks]).astype(MXU_DTYPE)        # (NB, E, 3E)
    wo_h = jnp.stack([p["wo"].reshape(heads, D, E)
                      for p in blocks]).astype(MXU_DTYPE)        # (NB, H, D, E)
    w1 = jnp.stack([p["w1"] for p in blocks]).astype(MXU_DTYPE)  # (NB, E, hid)
    w2 = jnp.stack([p["w2"] for p in blocks]).astype(MXU_DTYPE)  # (NB, hid, E)
    nv = jnp.stack([jnp.concatenate(
        [p["ln1w"], p["ln1b"], p["bo"], p["ln2w"], p["ln2b"], p["b2"]],
        axis=0) for p in blocks]).astype(jnp.float32)            # (NB, 6, E)
    b1s = jnp.stack([p["b1"] for p in blocks]).astype(jnp.float32)  # (NB,1,hid)
    wc_p = jnp.zeros((E, Cp), jnp.float32).at[:, :C].set(wc).astype(MXU_DTYPE)
    bc_p = jnp.zeros((1, Cp), jnp.float32).at[:, :C].set(bc)

    kernel = functools.partial(gpt_fused_kernel, num_blocks=NB, heads=heads,
                               embed=E, seq=S)

    out_p = pl.pallas_call(
        kernel,
        out_shape=jax.ShapeDtypeStruct((B, S, Cp), jnp.float32),
        grid=(B,),
        in_specs=[
            pl.BlockSpec((None, S, E), lambda b: (b, 0, 0)),       # x
            pl.BlockSpec((S, E), lambda b: (0, 0)),                # pe
            pl.BlockSpec((NB, 6, E), lambda b: (0, 0, 0)),         # LN/bias pack
            pl.BlockSpec((NB, 1, hidden), lambda b: (0, 0, 0)),    # b1 pack
            pl.BlockSpec((1, Cp), lambda b: (0, 0)),               # bc (padded)
            pl.BlockSpec((NB, E, 3 * E), lambda b: (0, 0, 0)),     # Wqkv stack
            pl.BlockSpec((NB, heads, D, E), lambda b: (0, 0, 0, 0)),  # Wo stack
            pl.BlockSpec((NB, E, hidden), lambda b: (0, 0, 0)),    # W1 stack
            pl.BlockSpec((NB, hidden, E), lambda b: (0, 0, 0)),    # W2 stack
            pl.BlockSpec((E, Cp), lambda b: (0, 0)),               # Wc (padded)
        ],
        out_specs=pl.BlockSpec((None, S, Cp), lambda b: (b, 0, 0)),
        compiler_params=pltpu.CompilerParams(
            dimension_semantics=("parallel",),       # v7x: 2 TCs share batches
            vmem_limit_bytes=32 * 1024 * 1024),      # explicit, fits all gens
    )(x, pe, nv, b1s, bc_p, wqkv, wo_h, w1, w2, wc_p)

    return out_p[..., :C]


# --------------------------------------------------------------------------
# Deterministic parameter / buffer construction
# --------------------------------------------------------------------------
def make_positional_encoding(seq_len, embed):
    inv_freq = 1.0 / (10000.0 ** (jnp.arange(0, embed, 2, dtype=jnp.float32) / embed))
    position = jnp.arange(seq_len, dtype=jnp.float32)
    pos_emb = jnp.einsum("i,j->ij", position, inv_freq)
    pe = jnp.zeros((seq_len, embed), jnp.float32)
    pe = pe.at[:, 0::2].set(jnp.sin(pos_emb))
    pe = pe.at[:, 1::2].set(jnp.cos(pos_emb))
    return pe


def init_params(key, embed, heads, ffn_expansion, num_blocks, out_classes):
    hidden = embed * ffn_expansion
    blocks = []
    for _ in range(num_blocks):
        key, k0, k1, k2, k3, k4, k5 = jax.random.split(key, 7)
        blocks.append(dict(
            ln1w=jnp.ones((1, embed), jnp.float32),
            ln1b=jnp.zeros((1, embed), jnp.float32),
            wq=0.02 * jax.random.normal(k0, (embed, embed), jnp.float32),
            wk=0.02 * jax.random.normal(k1, (embed, embed), jnp.float32),
            wv=0.02 * jax.random.normal(k2, (embed, embed), jnp.float32),
            wo=0.02 * jax.random.normal(k3, (embed, embed), jnp.float32),
            bo=jnp.zeros((1, embed), jnp.float32),
            ln2w=jnp.ones((1, embed), jnp.float32),
            ln2b=jnp.zeros((1, embed), jnp.float32),
            w1=0.02 * jax.random.normal(k4, (embed, hidden), jnp.float32),
            b1=jnp.zeros((1, hidden), jnp.float32),
            w2=0.02 * jax.random.normal(k5, (hidden, embed), jnp.float32),
            b2=jnp.zeros((1, embed), jnp.float32),
        ))
    key, kc = jax.random.split(key)
    wc = 0.02 * jax.random.normal(kc, (embed, out_classes), jnp.float32)
    bc = jnp.zeros((1, out_classes), jnp.float32)
    return blocks, wc, bc


# --------------------------------------------------------------------------
if __name__ == "__main__":
    EMBED = 32
    SEQ = 8
    OUT_CLASSES = 10
    NUM_BLOCKS = 2
    HEADS = 4
    FFN_EXPANSION = 4
    BATCH = 2

    root = jax.random.PRNGKey(0)
    kx, kp = jax.random.split(root)

    x = jax.random.normal(kx, (BATCH, SEQ, EMBED), jnp.float32)
    pe = make_positional_encoding(SEQ, EMBED)
    blocks, wc, bc = init_params(kp, EMBED, HEADS, FFN_EXPANSION,
                                 NUM_BLOCKS, OUT_CLASSES)

    out = gpt_forward(x, pe, blocks, wc, bc, HEADS)
    out = jax.block_until_ready(out)
    assert out.shape == (BATCH, SEQ, OUT_CLASSES)
    assert bool(jnp.all(jnp.isfinite(out)))
    print("KERNEL_OK")
</pallas_src>

<mosaic_0001>
module attributes {stable_mosaic.version = 11 : i64} {
  func.func @gpt_fused_kernel(%arg0: i32, %arg1: memref<1x8x32xf32, #tpu.memory_space<vmem>>, %arg2: memref<8x32xf32, #tpu.memory_space<vmem>>, %arg3: memref<2x6x32xf32, #tpu.memory_space<vmem>>, %arg4: memref<2x1x128xf32, #tpu.memory_space<vmem>>, %arg5: memref<1x128xf32, #tpu.memory_space<vmem>>, %arg6: memref<2x32x96xbf16, #tpu.memory_space<vmem>>, %arg7: memref<2x4x8x32xbf16, #tpu.memory_space<vmem>>, %arg8: memref<2x32x128xbf16, #tpu.memory_space<vmem>>, %arg9: memref<2x128x32xbf16, #tpu.memory_space<vmem>>, %arg10: memref<32x128xbf16, #tpu.memory_space<vmem>>, %arg11: memref<1x8x128xf32, #tpu.memory_space<vmem>>) attributes {dimension_semantics = [#tpu.dimension_semantics<parallel>], iteration_bounds = array<i64: 2>, scalar_prefetch = 0 : i64, scratch_operands = 0 : i64, tpu.core_type = #tpu.core_type<tc>, window_params = [{transform_indices = @transform_0, window_bounds = array<i64: 1, 8, 32>}, {pipeline_mode = #tpu.pipeline_mode<synchronous>, transform_indices = @transform_1, window_bounds = array<i64: 8, 32>}, {pipeline_mode = #tpu.pipeline_mode<synchronous>, transform_indices = @transform_2, window_bounds = array<i64: 2, 6, 32>}, {pipeline_mode = #tpu.pipeline_mode<synchronous>, transform_indices = @transform_3, window_bounds = array<i64: 2, 1, 128>}, {pipeline_mode = #tpu.pipeline_mode<synchronous>, transform_indices = @transform_4, window_bounds = array<i64: 1, 128>}, {pipeline_mode = #tpu.pipeline_mode<synchronous>, transform_indices = @transform_5, window_bounds = array<i64: 2, 32, 96>}, {pipeline_mode = #tpu.pipeline_mode<synchronous>, transform_indices = @transform_6, window_bounds = array<i64: 2, 4, 8, 32>}, {pipeline_mode = #tpu.pipeline_mode<synchronous>, transform_indices = @transform_7, window_bounds = array<i64: 2, 32, 128>}, {pipeline_mode = #tpu.pipeline_mode<synchronous>, transform_indices = @transform_8, window_bounds = array<i64: 2, 128, 32>}, {pipeline_mode = #tpu.pipeline_mode<synchronous>, transform_indices = @transform_9, window_bounds = array<i64: 32, 128>}, {transform_indices = @transform_10, window_bounds = array<i64: 1, 8, 128>}]} {
    %c0 = arith.constant 0 : index
    %c0_0 = arith.constant 0 : index
    %c0_1 = arith.constant 0 : index
    %0 = vector.load %arg1[%c0, %c0_0, %c0_1] : memref<1x8x32xf32, #tpu.memory_space<vmem>>, vector<1x8x32xf32>
    %1 = vector.shape_cast %0 : vector<1x8x32xf32> to vector<8x32xf32>
    %c0_2 = arith.constant 0 : index
    %c0_3 = arith.constant 0 : index
    %2 = vector.load %arg2[%c0_2, %c0_3] : memref<8x32xf32, #tpu.memory_space<vmem>>, vector<8x32xf32>
    %3 = arith.addf %1, %2 : vector<8x32xf32>
    %4 = tpu.iota {dimensions = array<i32: 0>} : vector<8x8xi32>
    %5 = tpu.iota {dimensions = array<i32: 1>} : vector<8x8xi32>
    %6 = arith.cmpi sle, %5, %4 : vector<8x8xi32>
    %cst = arith.constant 0.000000e+00 : f32
    %cst_4 = arith.constant -1.000000e+30 : f32
    %7 = vector.broadcast %cst : f32 to vector<8x8xf32>
    %8 = vector.broadcast %cst_4 : f32 to vector<8x8xf32>
    %9 = arith.select %6, %7, %8 : vector<8x8xi1>, vector<8x8xf32>
    %c0_5 = arith.constant 0 : index
    %c0_6 = arith.constant 0 : index
    %c0_7 = arith.constant 0 : index
    %10 = vector.load %arg3[%c0_5, %c0_6, %c0_7] : memref<2x6x32xf32, #tpu.memory_space<vmem>>, vector<1x6x32xf32>
    %11 = vector.shape_cast %10 : vector<1x6x32xf32> to vector<6x32xf32>
    %12 = vector.extract_strided_slice %11 {offsets = [0, 0], sizes = [1, 32], strides = [1, 1]} : vector<6x32xf32> to vector<1x32xf32>
    %13 = vector.extract_strided_slice %11 {offsets = [1, 0], sizes = [1, 32], strides = [1, 1]} : vector<6x32xf32> to vector<1x32xf32>
    %14 = vector.extract_strided_slice %11 {offsets = [2, 0], sizes = [1, 32], strides = [1, 1]} : vector<6x32xf32> to vector<1x32xf32>
    %15 = vector.extract_strided_slice %11 {offsets = [3, 0], sizes = [1, 32], strides = [1, 1]} : vector<6x32xf32> to vector<1x32xf32>
    %16 = vector.extract_strided_slice %11 {offsets = [4, 0], sizes = [1, 32], strides = [1, 1]} : vector<6x32xf32> to vector<1x32xf32>
    %17 = vector.extract_strided_slice %11 {offsets = [5, 0], sizes = [1, 32], strides = [1, 1]} : vector<6x32xf32> to vector<1x32xf32>
    %c0_8 = arith.constant 0 : index
    %c0_9 = arith.constant 0 : index
    %c0_10 = arith.constant 0 : index
    %18 = vector.load %arg4[%c0_8, %c0_9, %c0_10] : memref<2x1x128xf32, #tpu.memory_space<vmem>>, vector<1x1x128xf32>
    %19 = vector.shape_cast %18 : vector<1x1x128xf32> to vector<1x128xf32>
    %cst_11 = arith.constant dense<0.000000e+00> : vector<8xf32>
    %20 = vector.multi_reduction <add>, %3, %cst_11 [1] : vector<8x32xf32> to vector<8xf32>
    %21 = vector.shape_cast %20 : vector<8xf32> to vector<8x1xf32>
    %cst_12 = arith.constant 3.200000e+01 : f32
    %22 = vector.broadcast %cst_12 : f32 to vector<8x1xf32>
    %23 = arith.divf %21, %22 : vector<8x1xf32>
    %24 = vector.broadcast %23 : vector<8x1xf32> to vector<8x32xf32>
    %25 = arith.subf %3, %24 : vector<8x32xf32>
    %26 = arith.mulf %25, %25 : vector<8x32xf32>
    %cst_13 = arith.constant dense<0.000000e+00> : vector<8xf32>
    %27 = vector.multi_reduction <add>, %26, %cst_13 [1] : vector<8x32xf32> to vector<8xf32>
    %28 = vector.shape_cast %27 : vector<8xf32> to vector<8x1xf32>
    %cst_14 = arith.constant 3.200000e+01 : f32
    %29 = vector.broadcast %cst_14 : f32 to vector<8x1xf32>
    %30 = arith.divf %28, %29 : vector<8x1xf32>
    %31 = vector.broadcast %23 : vector<8x1xf32> to vector<8x32xf32>
    %32 = arith.subf %3, %31 : vector<8x32xf32>
    %cst_15 = arith.constant 9.99999974E-6 : f32
    %33 = vector.broadcast %cst_15 : f32 to vector<8x1xf32>
    %34 = arith.addf %30, %33 : vector<8x1xf32>
    %35 = math.rsqrt %34 : vector<8x1xf32>
    %36 = vector.broadcast %35 : vector<8x1xf32> to vector<8x32xf32>
    %37 = arith.mulf %32, %36 : vector<8x32xf32>
    %38 = vector.broadcast %12 : vector<1x32xf32> to vector<8x32xf32>
    %39 = arith.mulf %37, %38 : vector<8x32xf32>
    %40 = vector.broadcast %13 : vector<1x32xf32> to vector<8x32xf32>
    %41 = arith.addf %39, %40 : vector<8x32xf32>
    %42 = arith.truncf %41 : vector<8x32xf32> to vector<8x32xbf16>
    %c0_16 = arith.constant 0 : index
    %c0_17 = arith.constant 0 : index
    %c0_18 = arith.constant 0 : index
    %43 = vector.load %arg6[%c0_16, %c0_17, %c0_18] : memref<2x32x96xbf16, #tpu.memory_space<vmem>>, vector<1x32x96xbf16>
    %44 = vector.shape_cast %43 : vector<1x32x96xbf16> to vector<32x96xbf16>
    %cst_19 = arith.constant dense<0.000000e+00> : vector<8x96xf32>
    %45 = tpu.matmul %42, %44, %cst_19 {dimension_numbers = #tpu.dot_dimension_numbers<[1], [0], [0], [1], [0, 0, 1, 1], [], []>} : vector<8x32xbf16>, vector<32x96xbf16>, vector<8x96xf32> -> vector<8x96xf32>
    %46 = vector.extract_strided_slice %45 {offsets = [0, 0], sizes = [8, 32], strides = [1, 1]} : vector<8x96xf32> to vector<8x32xf32>
    %cst_20 = arith.constant 0.176776692 : f32
    %47 = vector.broadcast %cst_20 : f32 to vector<8x32xf32>
    %48 = arith.mulf %46, %47 : vector<8x32xf32>
    %49 = vector.extract_strided_slice %45 {offsets = [0, 32], sizes = [8, 32], strides = [1, 1]} : vector<8x96xf32> to vector<8x32xf32>
    %50 = vector.extract_strided_slice %45 {offsets = [0, 64], sizes = [8, 32], strides = [1, 1]} : vector<8x96xf32> to vector<8x32xf32>
    %51 = vector.extract_strided_slice %48 {offsets = [0, 0], sizes = [8, 8], strides = [1, 1]} : vector<8x32xf32> to vector<8x8xf32>
    %52 = vector.extract_strided_slice %48 {offsets = [0, 8], sizes = [8, 8], strides = [1, 1]} : vector<8x32xf32> to vector<8x8xf32>
    %53 = vector.extract_strided_slice %48 {offsets = [0, 16], sizes = [8, 8], strides = [1, 1]} : vector<8x32xf32> to vector<8x8xf32>
    %54 = vector.extract_strided_slice %48 {offsets = [0, 24], sizes = [8, 8], strides = [1, 1]} : vector<8x32xf32> to vector<8x8xf32>
    %55 = vector.shape_cast %51 : vector<8x8xf32> to vector<1x8x8xf32>
    %56 = vector.shape_cast %52 : vector<8x8xf32> to vector<1x8x8xf32>
    %57 = vector.shape_cast %53 : vector<8x8xf32> to vector<1x8x8xf32>
    %58 = vector.shape_cast %54 : vector<8x8xf32> to vector<1x8x8xf32>
    %59 = tpu.concatenate %55, %56, %57, %58 in 0 : vector<1x8x8xf32>, vector<1x8x8xf32>, vector<1x8x8xf32>, vector<1x8x8xf32> -> vector<4x8x8xf32>
    %60 = vector.extract_strided_slice %49 {offsets = [0, 0], sizes = [8, 8], strides = [1, 1]} : vector<8x32xf32> to vector<8x8xf32>
    %61 = vector.extract_strided_slice %49 {offsets = [0, 8], sizes = [8, 8], strides = [1, 1]} : vector<8x32xf32> to vector<8x8xf32>
    %62 = vector.extract_strided_slice %49 {offsets = [0, 16], sizes = [8, 8], strides = [1, 1]} : vector<8x32xf32> to vector<8x8xf32>
    %63 = vector.extract_strided_slice %49 {offsets = [0, 24], sizes = [8, 8], strides = [1, 1]} : vector<8x32xf32> to vector<8x8xf32>
    %64 = vector.shape_cast %60 : vector<8x8xf32> to vector<1x8x8xf32>
    %65 = vector.shape_cast %61 : vector<8x8xf32> to vector<1x8x8xf32>
    %66 = vector.shape_cast %62 : vector<8x8xf32> to vector<1x8x8xf32>
    %67 = vector.shape_cast %63 : vector<8x8xf32> to vector<1x8x8xf32>
    %68 = tpu.concatenate %64, %65, %66, %67 in 0 : vector<1x8x8xf32>, vector<1x8x8xf32>, vector<1x8x8xf32>, vector<1x8x8xf32> -> vector<4x8x8xf32>
    %69 = vector.extract_strided_slice %50 {offsets = [0, 0], sizes = [8, 8], strides = [1, 1]} : vector<8x32xf32> to vector<8x8xf32>
    %70 = vector.extract_strided_slice %50 {offsets = [0, 8], sizes = [8, 8], strides = [1, 1]} : vector<8x32xf32> to vector<8x8xf32>
    %71 = vector.extract_strided_slice %50 {offsets = [0, 16], sizes = [8, 8], strides = [1, 1]} : vector<8x32xf32> to vector<8x8xf32>
    %72 = vector.extract_strided_slice %50 {offsets = [0, 24], sizes = [8, 8], strides = [1, 1]} : vector<8x32xf32> to vector<8x8xf32>
    %73 = vector.shape_cast %69 : vector<8x8xf32> to vector<1x8x8xf32>
    %74 = vector.shape_cast %70 : vector<8x8xf32> to vector<1x8x8xf32>
    %75 = vector.shape_cast %71 : vector<8x8xf32> to vector<1x8x8xf32>
    %76 = vector.shape_cast %72 : vector<8x8xf32> to vector<1x8x8xf32>
    %77 = tpu.concatenate %73, %74, %75, %76 in 0 : vector<1x8x8xf32>, vector<1x8x8xf32>, vector<1x8x8xf32>, vector<1x8x8xf32> -> vector<4x8x8xf32>
    %78 = arith.truncf %59 : vector<4x8x8xf32> to vector<4x8x8xbf16>
    %79 = arith.truncf %68 : vector<4x8x8xf32> to vector<4x8x8xbf16>
    "tpu.trace_start"() <{level = 10 : i32, message = "hqd,hkd->hqk"}> : () -> ()
    %cst_21 = arith.constant dense<0.000000e+00> : vector<4x8x8xf32>
    %80 = tpu.matmul %78, %79, %cst_21 {dimension_numbers = #tpu.dot_dimension_numbers<[2], [2], [1], [1], [0, 0, 0, 1, 1, 1], [0], [0]>} : vector<4x8x8xbf16>, vector<4x8x8xbf16>, vector<4x8x8xf32> -> vector<4x8x8xf32>
    "tpu.trace_stop"() : () -> ()
    %81 = vector.shape_cast %9 : vector<8x8xf32> to vector<1x8x8xf32>
    %82 = vector.broadcast %81 : vector<1x8x8xf32> to vector<4x8x8xf32>
    %83 = arith.addf %80, %82 : vector<4x8x8xf32>
    %cst_22 = arith.constant dense<0xFF800000> : vector<4x8xf32>
    %84 = vector.multi_reduction <maximumf>, %83, %cst_22 [2] : vector<4x8x8xf32> to vector<4x8xf32>
    %85 = vector.shape_cast %84 : vector<4x8xf32> to vector<4x8x1xf32>
    %86 = vector.broadcast %85 : vector<4x8x1xf32> to vector<4x8x8xf32>
    %87 = arith.subf %83, %86 : vector<4x8x8xf32>
    %88 = math.exp %87 : vector<4x8x8xf32>
    %cst_23 = arith.constant dense<0.000000e+00> : vector<4x8xf32>
    %89 = vector.multi_reduction <add>, %88, %cst_23 [2] : vector<4x8x8xf32> to vector<4x8xf32>
    %90 = vector.shape_cast %89 : vector<4x8xf32> to vector<4x8x1xf32>
    %91 = tpu.reciprocal %90 {approx = true} : vector<4x8x1xf32> -> vector<4x8x1xf32>
    %92 = vector.broadcast %91 : vector<4x8x1xf32> to vector<4x8x8xf32>
    %93 = arith.mulf %88, %92 : vector<4x8x8xf32>
    %94 = arith.truncf %93 : vector<4x8x8xf32> to vector<4x8x8xbf16>
    %95 = arith.truncf %77 : vector<4x8x8xf32> to vector<4x8x8xbf16>
    "tpu.trace_start"() <{level = 10 : i32, message = "hqk,hkd->hqd"}> : () -> ()
    %cst_24 = arith.constant dense<0.000000e+00> : vector<4x8x8xf32>
    %96 = tpu.matmul %94, %95, %cst_24 {dimension_numbers = #tpu.dot_dimension_numbers<[2], [1], [1], [2], [0, 0, 0, 1, 1, 2], [0], [0]>} : vector<4x8x8xbf16>, vector<4x8x8xbf16>, vector<4x8x8xf32> -> vector<4x8x8xf32>
    "tpu.trace_stop"() : () -> ()
    %97 = arith.truncf %96 : vector<4x8x8xf32> to vector<4x8x8xbf16>
    %c0_25 = arith.constant 0 : index
    %c0_26 = arith.constant 0 : index
    %c0_27 = arith.constant 0 : index
    %c0_28 = arith.constant 0 : index
    %98 = vector.load %arg7[%c0_25, %c0_26, %c0_27, %c0_28] : memref<2x4x8x32xbf16, #tpu.memory_space<vmem>>, vector<1x4x8x32xbf16>
    %99 = vector.shape_cast %98 : vector<1x4x8x32xbf16> to vector<4x8x32xbf16>
    "tpu.trace_start"() <{level = 10 : i32, message = "hqd,hde->hqe"}> : () -> ()
    %cst_29 = arith.constant dense<0.000000e+00> : vector<4x8x32xf32>
    %100 = tpu.matmul %97, %99, %cst_29 {dimension_numbers = #tpu.dot_dimension_numbers<[2], [1], [1], [2], [0, 0, 0, 1, 1, 2], [0], [0]>} : vector<4x8x8xbf16>, vector<4x8x32xbf16>, vector<4x8x32xf32> -> vector<4x8x32xf32>
    "tpu.trace_stop"() : () -> ()
    %cst_30 = arith.constant dense<0.000000e+00> : vector<8x32xf32>
    %101 = vector.multi_reduction <add>, %100, %cst_30 [0] : vector<4x8x32xf32> to vector<8x32xf32>
    %102 = vector.broadcast %14 : vector<1x32xf32> to vector<8x32xf32>
    %103 = arith.addf %101, %102 : vector<8x32xf32>
    %104 = arith.addf %103, %3 : vector<8x32xf32>
    %cst_31 = arith.constant dense<0.000000e+00> : vector<8xf32>
    %105 = vector.multi_reduction <add>, %104, %cst_31 [1] : vector<8x32xf32> to vector<8xf32>
    %106 = vector.shape_cast %105 : vector<8xf32> to vector<8x1xf32>
    %cst_32 = arith.constant 3.200000e+01 : f32
    %107 = vector.broadcast %cst_32 : f32 to vector<8x1xf32>
    %108 = arith.divf %106, %107 : vector<8x1xf32>
    %109 = vector.broadcast %108 : vector<8x1xf32> to vector<8x32xf32>
    %110 = arith.subf %104, %109 : vector<8x32xf32>
    %111 = arith.mulf %110, %110 : vector<8x32xf32>
    %cst_33 = arith.constant dense<0.000000e+00> : vector<8xf32>
    %112 = vector.multi_reduction <add>, %111, %cst_33 [1] : vector<8x32xf32> to vector<8xf32>
    %113 = vector.shape_cast %112 : vector<8xf32> to vector<8x1xf32>
    %cst_34 = arith.constant 3.200000e+01 : f32
    %114 = vector.broadcast %cst_34 : f32 to vector<8x1xf32>
    %115 = arith.divf %113, %114 : vector<8x1xf32>
    %116 = vector.broadcast %108 : vector<8x1xf32> to vector<8x32xf32>
    %117 = arith.subf %104, %116 : vector<8x32xf32>
    %cst_35 = arith.constant 9.99999974E-6 : f32
    %118 = vector.broadcast %cst_35 : f32 to vector<8x1xf32>
    %119 = arith.addf %115, %118 : vector<8x1xf32>
    %120 = math.rsqrt %119 : vector<8x1xf32>
    %121 = vector.broadcast %120 : vector<8x1xf32> to vector<8x32xf32>
    %122 = arith.mulf %117, %121 : vector<8x32xf32>
    %123 = vector.broadcast %15 : vector<1x32xf32> to vector<8x32xf32>
    %124 = arith.mulf %122, %123 : vector<8x32xf32>
    %125 = vector.broadcast %16 : vector<1x32xf32> to vector<8x32xf32>
    %126 = arith.addf %124, %125 : vector<8x32xf32>
    %127 = arith.truncf %126 : vector<8x32xf32> to vector<8x32xbf16>
    %c0_36 = arith.constant 0 : index
    %c0_37 = arith.constant 0 : index
    %c0_38 = arith.constant 0 : index
    %128 = vector.load %arg8[%c0_36, %c0_37, %c0_38] : memref<2x32x128xbf16, #tpu.memory_space<vmem>>, vector<1x32x128xbf16>
    %129 = vector.shape_cast %128 : vector<1x32x128xbf16> to vector<32x128xbf16>
    %cst_39 = arith.constant dense<0.000000e+00> : vector<8x128xf32>
    %130 = tpu.matmul %127, %129, %cst_39 {dimension_numbers = #tpu.dot_dimension_numbers<[1], [0], [0], [1], [0, 0, 1, 1], [], []>} : vector<8x32xbf16>, vector<32x128xbf16>, vector<8x128xf32> -> vector<8x128xf32>
    %131 = vector.broadcast %19 : vector<1x128xf32> to vector<8x128xf32>
    %132 = arith.addf %130, %131 : vector<8x128xf32>
    %cst_40 = arith.constant 0.000000e+00 : f32
    %133 = vector.broadcast %cst_40 : f32 to vector<8x128xf32>
    %134 = arith.maximumf %132, %133 : vector<8x128xf32>
    %135 = arith.truncf %134 : vector<8x128xf32> to vector<8x128xbf16>
    %c0_41 = arith.constant 0 : index
    %c0_42 = arith.constant 0 : index
    %c0_43 = arith.constant 0 : index
    %136 = vector.load %arg9[%c0_41, %c0_42, %c0_43] : memref<2x128x32xbf16, #tpu.memory_space<vmem>>, vector<1x128x32xbf16>
    %137 = vector.shape_cast %136 : vector<1x128x32xbf16> to vector<128x32xbf16>
    %cst_44 = arith.constant dense<0.000000e+00> : vector<8x32xf32>
    %138 = tpu.matmul %135, %137, %cst_44 {dimension_numbers = #tpu.dot_dimension_numbers<[1], [0], [0], [1], [0, 0, 1, 1], [], []>} : vector<8x128xbf16>, vector<128x32xbf16>, vector<8x32xf32> -> vector<8x32xf32>
    %139 = vector.broadcast %17 : vector<1x32xf32> to vector<8x32xf32>
    %140 = arith.addf %138, %139 : vector<8x32xf32>
    %141 = arith.addf %140, %104 : vector<8x32xf32>
    %c1 = arith.constant 1 : index
    %c0_45 = arith.constant 0 : index
    %c0_46 = arith.constant 0 : index
    %142 = vector.load %arg3[%c1, %c0_45, %c0_46] : memref<2x6x32xf32, #tpu.memory_space<vmem>>, vector<1x6x32xf32>
    %143 = vector.shape_cast %142 : vector<1x6x32xf32> to vector<6x32xf32>
    %144 = vector.extract_strided_slice %143 {offsets = [0, 0], sizes = [1, 32], strides = [1, 1]} : vector<6x32xf32> to vector<1x32xf32>
    %145 = vector.extract_strided_slice %143 {offsets = [1, 0], sizes = [1, 32], strides = [1, 1]} : vector<6x32xf32> to vector<1x32xf32>
    %146 = vector.extract_strided_slice %143 {offsets = [2, 0], sizes = [1, 32], strides = [1, 1]} : vector<6x32xf32> to vector<1x32xf32>
    %147 = vector.extract_strided_slice %143 {offsets = [3, 0], sizes = [1, 32], strides = [1, 1]} : vector<6x32xf32> to vector<1x32xf32>
    %148 = vector.extract_strided_slice %143 {offsets = [4, 0], sizes = [1, 32], strides = [1, 1]} : vector<6x32xf32> to vector<1x32xf32>
    %149 = vector.extract_strided_slice %143 {offsets = [5, 0], sizes = [1, 32], strides = [1, 1]} : vector<6x32xf32> to vector<1x32xf32>
    %c1_47 = arith.constant 1 : index
    %c0_48 = arith.constant 0 : index
    %c0_49 = arith.constant 0 : index
    %150 = vector.load %arg4[%c1_47, %c0_48, %c0_49] : memref<2x1x128xf32, #tpu.memory_space<vmem>>, vector<1x1x128xf32>
    %151 = vector.shape_cast %150 : vector<1x1x128xf32> to vector<1x128xf32>
    %cst_50 = arith.constant dense<0.000000e+00> : vector<8xf32>
    %152 = vector.multi_reduction <add>, %141, %cst_50 [1] : vector<8x32xf32> to vector<8xf32>
    %153 = vector.shape_cast %152 : vector<8xf32> to vector<8x1xf32>
    %cst_51 = arith.constant 3.200000e+01 : f32
    %154 = vector.broadcast %cst_51 : f32 to vector<8x1xf32>
    %155 = arith.divf %153, %154 : vector<8x1xf32>
    %156 = vector.broadcast %155 : vector<8x1xf32> to vector<8x32xf32>
    %157 = arith.subf %141, %156 : vector<8x32xf32>
    %158 = arith.mulf %157, %157 : vector<8x32xf32>
    %cst_52 = arith.constant dense<0.000000e+00> : vector<8xf32>
    %159 = vector.multi_reduction <add>, %158, %cst_52 [1] : vector<8x32xf32> to vector<8xf32>
    %160 = vector.shape_cast %159 : vector<8xf32> to vector<8x1xf32>
    %cst_53 = arith.constant 3.200000e+01 : f32
    %161 = vector.broadcast %cst_53 : f32 to vector<8x1xf32>
    %162 = arith.divf %160, %161 : vector<8x1xf32>
    %163 = vector.broadcast %155 : vector<8x1xf32> to vector<8x32xf32>
    %164 = arith.subf %141, %163 : vector<8x32xf32>
    %cst_54 = arith.constant 9.99999974E-6 : f32
    %165 = vector.broadcast %cst_54 : f32 to vector<8x1xf32>
    %166 = arith.addf %162, %165 : vector<8x1xf32>
    %167 = math.rsqrt %166 : vector<8x1xf32>
    %168 = vector.broadcast %167 : vector<8x1xf32> to vector<8x32xf32>
    %169 = arith.mulf %164, %168 : vector<8x32xf32>
    %170 = vector.broadcast %144 : vector<1x32xf32> to vector<8x32xf32>
    %171 = arith.mulf %169, %170 : vector<8x32xf32>
    %172 = vector.broadcast %145 : vector<1x32xf32> to vector<8x32xf32>
    %173 = arith.addf %171, %172 : vector<8x32xf32>
    %174 = arith.truncf %173 : vector<8x32xf32> to vector<8x32xbf16>
    %c1_55 = arith.constant 1 : index
    %c0_56 = arith.constant 0 : index
    %c0_57 = arith.constant 0 : index
    %175 = vector.load %arg6[%c1_55, %c0_56, %c0_57] : memref<2x32x96xbf16, #tpu.memory_space<vmem>>, vector<1x32x96xbf16>
    %176 = vector.shape_cast %175 : vector<1x32x96xbf16> to vector<32x96xbf16>
    %cst_58 = arith.constant dense<0.000000e+00> : vector<8x96xf32>
    %177 = tpu.matmul %174, %176, %cst_58 {dimension_numbers = #tpu.dot_dimension_numbers<[1], [0], [0], [1], [0, 0, 1, 1], [], []>} : vector<8x32xbf16>, vector<32x96xbf16>, vector<8x96xf32> -> vector<8x96xf32>
    %178 = vector.extract_strided_slice %177 {offsets = [0, 0], sizes = [8, 32], strides = [1, 1]} : vector<8x96xf32> to vector<8x32xf32>
    %cst_59 = arith.constant 0.176776692 : f32
    %179 = vector.broadcast %cst_59 : f32 to vector<8x32xf32>
    %180 = arith.mulf %178, %179 : vector<8x32xf32>
    %181 = vector.extract_strided_slice %177 {offsets = [0, 32], sizes = [8, 32], strides = [1, 1]} : vector<8x96xf32> to vector<8x32xf32>
    %182 = vector.extract_strided_slice %177 {offsets = [0, 64], sizes = [8, 32], strides = [1, 1]} : vector<8x96xf32> to vector<8x32xf32>
    %183 = vector.extract_strided_slice %180 {offsets = [0, 0], sizes = [8, 8], strides = [1, 1]} : vector<8x32xf32> to vector<8x8xf32>
    %184 = vector.extract_strided_slice %180 {offsets = [0, 8], sizes = [8, 8], strides = [1, 1]} : vector<8x32xf32> to vector<8x8xf32>
    %185 = vector.extract_strided_slice %180 {offsets = [0, 16], sizes = [8, 8], strides = [1, 1]} : vector<8x32xf32> to vector<8x8xf32>
    %186 = vector.extract_strided_slice %180 {offsets = [0, 24], sizes = [8, 8], strides = [1, 1]} : vector<8x32xf32> to vector<8x8xf32>
    %187 = vector.shape_cast %183 : vector<8x8xf32> to vector<1x8x8xf32>
    %188 = vector.shape_cast %184 : vector<8x8xf32> to vector<1x8x8xf32>
    %189 = vector.shape_cast %185 : vector<8x8xf32> to vector<1x8x8xf32>
    %190 = vector.shape_cast %186 : vector<8x8xf32> to vector<1x8x8xf32>
    %191 = tpu.concatenate %187, %188, %189, %190 in 0 : vector<1x8x8xf32>, vector<1x8x8xf32>, vector<1x8x8xf32>, vector<1x8x8xf32> -> vector<4x8x8xf32>
    %192 = vector.extract_strided_slice %181 {offsets = [0, 0], sizes = [8, 8], strides = [1, 1]} : vector<8x32xf32> to vector<8x8xf32>
    %193 = vector.extract_strided_slice %181 {offsets = [0, 8], sizes = [8, 8], strides = [1, 1]} : vector<8x32xf32> to vector<8x8xf32>
    %194 = vector.extract_strided_slice %181 {offsets = [0, 16], sizes = [8, 8], strides = [1, 1]} : vector<8x32xf32> to vector<8x8xf32>
    %195 = vector.extract_strided_slice %181 {offsets = [0, 24], sizes = [8, 8], strides = [1, 1]} : vector<8x32xf32> to vector<8x8xf32>
    %196 = vector.shape_cast %192 : vector<8x8xf32> to vector<1x8x8xf32>
    %197 = vector.shape_cast %193 : vector<8x8xf32> to vector<1x8x8xf32>
    %198 = vector.shape_cast %194 : vector<8x8xf32> to vector<1x8x8xf32>
    %199 = vector.shape_cast %195 : vector<8x8xf32> to vector<1x8x8xf32>
    %200 = tpu.concatenate %196, %197, %198, %199 in 0 : vector<1x8x8xf32>, vector<1x8x8xf32>, vector<1x8x8xf32>, vector<1x8x8xf32> -> vector<4x8x8xf32>
    %201 = vector.extract_strided_slice %182 {offsets = [0, 0], sizes = [8, 8], strides = [1, 1]} : vector<8x32xf32> to vector<8x8xf32>
    %202 = vector.extract_strided_slice %182 {offsets = [0, 8], sizes = [8, 8], strides = [1, 1]} : vector<8x32xf32> to vector<8x8xf32>
    %203 = vector.extract_strided_slice %182 {offsets = [0, 16], sizes = [8, 8], strides = [1, 1]} : vector<8x32xf32> to vector<8x8xf32>
    %204 = vector.extract_strided_slice %182 {offsets = [0, 24], sizes = [8, 8], strides = [1, 1]} : vector<8x32xf32> to vector<8x8xf32>
    %205 = vector.shape_cast %201 : vector<8x8xf32> to vector<1x8x8xf32>
    %206 = vector.shape_cast %202 : vector<8x8xf32> to vector<1x8x8xf32>
    %207 = vector.shape_cast %203 : vector<8x8xf32> to vector<1x8x8xf32>
    %208 = vector.shape_cast %204 : vector<8x8xf32> to vector<1x8x8xf32>
    %209 = tpu.concatenate %205, %206, %207, %208 in 0 : vector<1x8x8xf32>, vector<1x8x8xf32>, vector<1x8x8xf32>, vector<1x8x8xf32> -> vector<4x8x8xf32>
    %210 = arith.truncf %191 : vector<4x8x8xf32> to vector<4x8x8xbf16>
    %211 = arith.truncf %200 : vector<4x8x8xf32> to vector<4x8x8xbf16>
    "tpu.trace_start"() <{level = 10 : i32, message = "hqd,hkd->hqk"}> : () -> ()
    %cst_60 = arith.constant dense<0.000000e+00> : vector<4x8x8xf32>
    %212 = tpu.matmul %210, %211, %cst_60 {dimension_numbers = #tpu.dot_dimension_numbers<[2], [2], [1], [1], [0, 0, 0, 1, 1, 1], [0], [0]>} : vector<4x8x8xbf16>, vector<4x8x8xbf16>, vector<4x8x8xf32> -> vector<4x8x8xf32>
    "tpu.trace_stop"() : () -> ()
    %213 = vector.shape_cast %9 : vector<8x8xf32> to vector<1x8x8xf32>
    %214 = vector.broadcast %213 : vector<1x8x8xf32> to vector<4x8x8xf32>
    %215 = arith.addf %212, %214 : vector<4x8x8xf32>
    %cst_61 = arith.constant dense<0xFF800000> : vector<4x8xf32>
    %216 = vector.multi_reduction <maximumf>, %215, %cst_61 [2] : vector<4x8x8xf32> to vector<4x8xf32>
    %217 = vector.shape_cast %216 : vector<4x8xf32> to vector<4x8x1xf32>
    %218 = vector.broadcast %217 : vector<4x8x1xf32> to vector<4x8x8xf32>
    %219 = arith.subf %215, %218 : vector<4x8x8xf32>
    %220 = math.exp %219 : vector<4x8x8xf32>
    %cst_62 = arith.constant dense<0.000000e+00> : vector<4x8xf32>
    %221 = vector.multi_reduction <add>, %220, %cst_62 [2] : vector<4x8x8xf32> to vector<4x8xf32>
    %222 = vector.shape_cast %221 : vector<4x8xf32> to vector<4x8x1xf32>
    %223 = tpu.reciprocal %222 {approx = true} : vector<4x8x1xf32> -> vector<4x8x1xf32>
    %224 = vector.broadcast %223 : vector<4x8x1xf32> to vector<4x8x8xf32>
    %225 = arith.mulf %220, %224 : vector<4x8x8xf32>
    %226 = arith.truncf %225 : vector<4x8x8xf32> to vector<4x8x8xbf16>
    %227 = arith.truncf %209 : vector<4x8x8xf32> to vector<4x8x8xbf16>
    "tpu.trace_start"() <{level = 10 : i32, message = "hqk,hkd->hqd"}> : () -> ()
    %cst_63 = arith.constant dense<0.000000e+00> : vector<4x8x8xf32>
    %228 = tpu.matmul %226, %227, %cst_63 {dimension_numbers = #tpu.dot_dimension_numbers<[2], [1], [1], [2], [0, 0, 0, 1, 1, 2], [0], [0]>} : vector<4x8x8xbf16>, vector<4x8x8xbf16>, vector<4x8x8xf32> -> vector<4x8x8xf32>
    "tpu.trace_stop"() : () -> ()
    %229 = arith.truncf %228 : vector<4x8x8xf32> to vector<4x8x8xbf16>
    %c1_64 = arith.constant 1 : index
    %c0_65 = arith.constant 0 : index
    %c0_66 = arith.constant 0 : index
    %c0_67 = arith.constant 0 : index
    %230 = vector.load %arg7[%c1_64, %c0_65, %c0_66, %c0_67] : memref<2x4x8x32xbf16, #tpu.memory_space<vmem>>, vector<1x4x8x32xbf16>
    %231 = vector.shape_cast %230 : vector<1x4x8x32xbf16> to vector<4x8x32xbf16>
    "tpu.trace_start"() <{level = 10 : i32, message = "hqd,hde->hqe"}> : () -> ()
    %cst_68 = arith.constant dense<0.000000e+00> : vector<4x8x32xf32>
    %232 = tpu.matmul %229, %231, %cst_68 {dimension_numbers = #tpu.dot_dimension_numbers<[2], [1], [1], [2], [0, 0, 0, 1, 1, 2], [0], [0]>} : vector<4x8x8xbf16>, vector<4x8x32xbf16>, vector<4x8x32xf32> -> vector<4x8x32xf32>
    "tpu.trace_stop"() : () -> ()
    %cst_69 = arith.constant dense<0.000000e+00> : vector<8x32xf32>
    %233 = vector.multi_reduction <add>, %232, %cst_69 [0] : vector<4x8x32xf32> to vector<8x32xf32>
    %234 = vector.broadcast %146 : vector<1x32xf32> to vector<8x32xf32>
    %235 = arith.addf %233, %234 : vector<8x32xf32>
    %236 = arith.addf %235, %141 : vector<8x32xf32>
    %cst_70 = arith.constant dense<0.000000e+00> : vector<8xf32>
    %237 = vector.multi_reduction <add>, %236, %cst_70 [1] : vector<8x32xf32> to vector<8xf32>
    %238 = vector.shape_cast %237 : vector<8xf32> to vector<8x1xf32>
    %cst_71 = arith.constant 3.200000e+01 : f32
    %239 = vector.broadcast %cst_71 : f32 to vector<8x1xf32>
    %240 = arith.divf %238, %239 : vector<8x1xf32>
    %241 = vector.broadcast %240 : vector<8x1xf32> to vector<8x32xf32>
    %242 = arith.subf %236, %241 : vector<8x32xf32>
    %243 = arith.mulf %242, %242 : vector<8x32xf32>
    %cst_72 = arith.constant dense<0.000000e+00> : vector<8xf32>
    %244 = vector.multi_reduction <add>, %243, %cst_72 [1] : vector<8x32xf32> to vector<8xf32>
    %245 = vector.shape_cast %244 : vector<8xf32> to vector<8x1xf32>
    %cst_73 = arith.constant 3.200000e+01 : f32
    %246 = vector.broadcast %cst_73 : f32 to vector<8x1xf32>
    %247 = arith.divf %245, %246 : vector<8x1xf32>
    %248 = vector.broadcast %240 : vector<8x1xf32> to vector<8x32xf32>
    %249 = arith.subf %236, %248 : vector<8x32xf32>
    %cst_74 = arith.constant 9.99999974E-6 : f32
    %250 = vector.broadcast %cst_74 : f32 to vector<8x1xf32>
    %251 = arith.addf %247, %250 : vector<8x1xf32>
    %252 = math.rsqrt %251 : vector<8x1xf32>
    %253 = vector.broadcast %252 : vector<8x1xf32> to vector<8x32xf32>
    %254 = arith.mulf %249, %253 : vector<8x32xf32>
    %255 = vector.broadcast %147 : vector<1x32xf32> to vector<8x32xf32>
    %256 = arith.mulf %254, %255 : vector<8x32xf32>
    %257 = vector.broadcast %148 : vector<1x32xf32> to vector<8x32xf32>
    %258 = arith.addf %256, %257 : vector<8x32xf32>
    %259 = arith.truncf %258 : vector<8x32xf32> to vector<8x32xbf16>
    %c1_75 = arith.constant 1 : index
    %c0_76 = arith.constant 0 : index
    %c0_77 = arith.constant 0 : index
    %260 = vector.load %arg8[%c1_75, %c0_76, %c0_77] : memref<2x32x128xbf16, #tpu.memory_space<vmem>>, vector<1x32x128xbf16>
    %261 = vector.shape_cast %260 : vector<1x32x128xbf16> to vector<32x128xbf16>
    %cst_78 = arith.constant dense<0.000000e+00> : vector<8x128xf32>
    %262 = tpu.matmul %259, %261, %cst_78 {dimension_numbers = #tpu.dot_dimension_numbers<[1], [0], [0], [1], [0, 0, 1, 1], [], []>} : vector<8x32xbf16>, vector<32x128xbf16>, vector<8x128xf32> -> vector<8x128xf32>
    %263 = vector.broadcast %151 : vector<1x128xf32> to vector<8x128xf32>
    %264 = arith.addf %262, %263 : vector<8x128xf32>
    %cst_79 = arith.constant 0.000000e+00 : f32
    %265 = vector.broadcast %cst_79 : f32 to vector<8x128xf32>
    %266 = arith.maximumf %264, %265 : vector<8x128xf32>
    %267 = arith.truncf %266 : vector<8x128xf32> to vector<8x128xbf16>
    %c1_80 = arith.constant 1 : index
    %c0_81 = arith.constant 0 : index
    %c0_82 = arith.constant 0 : index
    %268 = vector.load %arg9[%c1_80, %c0_81, %c0_82] : memref<2x128x32xbf16, #tpu.memory_space<vmem>>, vector<1x128x32xbf16>
    %269 = vector.shape_cast %268 : vector<1x128x32xbf16> to vector<128x32xbf16>
    %cst_83 = arith.constant dense<0.000000e+00> : vector<8x32xf32>
    %270 = tpu.matmul %267, %269, %cst_83 {dimension_numbers = #tpu.dot_dimension_numbers<[1], [0], [0], [1], [0, 0, 1, 1], [], []>} : vector<8x128xbf16>, vector<128x32xbf16>, vector<8x32xf32> -> vector<8x32xf32>
    %271 = vector.broadcast %149 : vector<1x32xf32> to vector<8x32xf32>
    %272 = arith.addf %270, %271 : vector<8x32xf32>
    %273 = arith.addf %272, %236 : vector<8x32xf32>
    %274 = arith.truncf %273 : vector<8x32xf32> to vector<8x32xbf16>
    %c0_84 = arith.constant 0 : index
    %c0_85 = arith.constant 0 : index
    %275 = vector.load %arg10[%c0_84, %c0_85] : memref<32x128xbf16, #tpu.memory_space<vmem>>, vector<32x128xbf16>
    %cst_86 = arith.constant dense<0.000000e+00> : vector<8x128xf32>
    %276 = tpu.matmul %274, %275, %cst_86 {dimension_numbers = #tpu.dot_dimension_numbers<[1], [0], [0], [1], [0, 0, 1, 1], [], []>} : vector<8x32xbf16>, vector<32x128xbf16>, vector<8x128xf32> -> vector<8x128xf32>
    %c0_87 = arith.constant 0 : index
    %c0_88 = arith.constant 0 : index
    %277 = vector.load %arg5[%c0_87, %c0_88] : memref<1x128xf32, #tpu.memory_space<vmem>>, vector<1x128xf32>
    %278 = vector.broadcast %277 : vector<1x128xf32> to vector<8x128xf32>
    %279 = arith.addf %276, %278 : vector<8x128xf32>
    %c0_89 = arith.constant 0 : index
    %c0_90 = arith.constant 0 : index
    %c0_91 = arith.constant 0 : index
    %280 = vector.load %arg11[%c0_89, %c0_90, %c0_91] : memref<1x8x128xf32, #tpu.memory_space<vmem>>, vector<1x8x128xf32>
    %281 = vector.shape_cast %280 : vector<1x8x128xf32> to vector<8x128xf32>
    %282 = vector.shape_cast %279 : vector<8x128xf32> to vector<1x8x128xf32>
    tpu.vector_store %arg11[%c0_89, %c0_90, %c0_91], %282 {strides = array<i32>} : memref<1x8x128xf32, #tpu.memory_space<vmem>>, vector<1x8x128xf32>,
    return
  }
  func.func @transform_0(%arg0: i32) -> (i32, i32, i32) {
    %c0_i32 = arith.constant 0 : i32
    %c0_i32_0 = arith.constant 0 : i32
    %c0_i32_1 = arith.constant 0 : i32
    return %arg0, %c0_i32, %c0_i32_0 : i32, i32, i32
  }
  func.func @transform_1(%arg0: i32) -> (i32, i32) {
    %c0_i32 = arith.constant 0 : i32
    %c0_i32_0 = arith.constant 0 : i32
    %c0_i32_1 = arith.constant 0 : i32
    return %c0_i32, %c0_i32_0 : i32, i32
  }
  func.func @transform_2(%arg0: i32) -> (i32, i32, i32) {
    %c0_i32 = arith.constant 0 : i32
    %c0_i32_0 = arith.constant 0 : i32
    %c0_i32_1 = arith.constant 0 : i32
    %c0_i32_2 = arith.constant 0 : i32
    return %c0_i32, %c0_i32_0, %c0_i32_1 : i32, i32, i32
  }
  func.func @transform_3(%arg0: i32) -> (i32, i32, i32) {
    %c0_i32 = arith.constant 0 : i32
    %c0_i32_0 = arith.constant 0 : i32
    %c0_i32_1 = arith.constant 0 : i32
    %c0_i32_2 = arith.constant 0 : i32
    return %c0_i32, %c0_i32_0, %c0_i32_1 : i32, i32, i32
  }
  func.func @transform_4(%arg0: i32) -> (i32, i32) {
    %c0_i32 = arith.constant 0 : i32
    %c0_i32_0 = arith.constant 0 : i32
    %c0_i32_1 = arith.constant 0 : i32
    return %c0_i32, %c0_i32_0 : i32, i32
  }
  func.func @transform_5(%arg0: i32) -> (i32, i32, i32) {
    %c0_i32 = arith.constant 0 : i32
    %c0_i32_0 = arith.constant 0 : i32
    %c0_i32_1 = arith.constant 0 : i32
    %c0_i32_2 = arith.constant 0 : i32
    return %c0_i32, %c0_i32_0, %c0_i32_1 : i32, i32, i32
  }
  func.func @transform_6(%arg0: i32) -> (i32, i32, i32, i32) {
    %c0_i32 = arith.constant 0 : i32
    %c0_i32_0 = arith.constant 0 : i32
    %c0_i32_1 = arith.constant 0 : i32
    %c0_i32_2 = arith.constant 0 : i32
    %c0_i32_3 = arith.constant 0 : i32
    return %c0_i32, %c0_i32_0, %c0_i32_1, %c0_i32_2 : i32, i32, i32, i32
  }
  func.func @transform_7(%arg0: i32) -> (i32, i32, i32) {
    %c0_i32 = arith.constant 0 : i32
    %c0_i32_0 = arith.constant 0 : i32
    %c0_i32_1 = arith.constant 0 : i32
    %c0_i32_2 = arith.constant 0 : i32
    return %c0_i32, %c0_i32_0, %c0_i32_1 : i32, i32, i32
  }
  func.func @transform_8(%arg0: i32) -> (i32, i32, i32) {
    %c0_i32 = arith.constant 0 : i32
    %c0_i32_0 = arith.constant 0 : i32
    %c0_i32_1 = arith.constant 0 : i32
    %c0_i32_2 = arith.constant 0 : i32
    return %c0_i32, %c0_i32_0, %c0_i32_1 : i32, i32, i32
  }
  func.func @transform_9(%arg0: i32) -> (i32, i32) {
    %c0_i32 = arith.constant 0 : i32
    %c0_i32_0 = arith.constant 0 : i32
    %c0_i32_1 = arith.constant 0 : i32
    return %c0_i32, %c0_i32_0 : i32, i32
  }
  func.func @transform_10(%arg0: i32) -> (i32, i32, i32) {
    %c0_i32 = arith.constant 0 : i32
    %c0_i32_0 = arith.constant 0 : i32
    %c0_i32_1 = arith.constant 0 : i32
    return %arg0, %c0_i32, %c0_i32_0 : i32, i32, i32
  }
}

</mosaic_0001>

<bundles_post_ra>
// kernel: tpu_custom_call.1
= control target key start
LH: loop header
LB: loop body
LE: loop exit
PB: predicated region body
PF: predicated region fallthrough
CT: control target
= control target key end

     0   :  { %15 = vsyncpa [#allocation3], 0  ;;  %s3628_s0 = inlined_call_operand.vmem [shape: f32[2,8,32], index: 0, kind: input, shape index: {}]   ;;  %s3629_s1 = inlined_call_operand.vmem [shape: f32[8,32], index: 1, kind: input, shape index: {}]   ;;  %s3630_s2 = inlined_call_operand.vmem [shape: f32[2,6,32], index: 2, kind: input, shape index: {}]   ;;  %s3631_s3 = inlined_call_operand.vmem [shape: f32[2,1,128], index: 3, kind: input, shape index: {}]   ;;  %s3632_s4 = inlined_call_operand.vmem [shape: f32[1,128], index: 4, kind: input, shape index: {}]   ;;  %s3633_s5 = inlined_call_operand.vmem [shape: bf16[2,32,96], index: 5, kind: input, shape index: {}]   ;;  %s3634_s6 = inlined_call_operand.vmem [shape: bf16[2,4,8,32], index: 6, kind: input, shape index: {}]   ;;  %s3635_s7 = inlined_call_operand.vmem [shape: bf16[2,32,128], index: 7, kind: input, shape index: {}]   ;;  %s3636_s8 = inlined_call_operand.vmem [shape: bf16[2,128,32], index: 8, kind: input, shape index: {}]   ;;  %s3637_s9 = inlined_call_operand.vmem [shape: bf16[32,128], index: 9, kind: input, shape index: {}]   ;;  %s3638_s10 = inlined_call_operand.hbm [shape: f32[2,8,128], index: 10, kind: output, shape index: {}]  }
   0x1   :  { %17 = vsyncpa [#allocation3 + $0x1], 0  ;;  %s3070_s13 = smov 0   ;;  %s3072_s14 = smov 0  }
   0x2   :  { %s3074_s15 = smov 0   ;;  %s3076_s16 = smov 0  }
   0x3 LB: > { %s3091_s17 = sadd.s32 4294967295, %s3004_s16   ;;  %s2426_s18 = sadd.s32 4294967294, %s3004_s16   ;;  %s3004_s16 = sphi %s3076_s16, %s3650_s16   ;;  %s3000_s15 = sphi %s3074_s15, %s3649_s15   ;;  %s2996_s14 = sphi %s3072_s14, %s3648_s14   ;;  %s2992_s13 = sphi %s3070_s13, %s3647_s13  }
   0x4   : > { %s3095_s19 = sadd.s32 1, %s3004_s16   ;;  %s245_s20 = sadd.s32 1, %s3000_s15 }
   0x5   : > { %s242_s21 = ssub.s32 %s3004_s16, %s3095_s19  ;;  %p255_p0 = scmp.ne.s32.totalorder %s3000_s15, %s2996_s14 }
   0x6   : > { %p243_p1 = scmp.eq.s32.totalorder %s242_s21, 0  ;;  %p256_p2 = scmp.eq.s32.totalorder %s3091_s17, 1 }
   0x7   : > { %p261_p3 = scmp.ne.s32.totalorder %s2996_s14, %s2992_s13  ;;  %p262_p4 = scmp.eq.s32.totalorder %s2426_s18, 1 }
   0x8   : > { %s3106_s22 = scalar_select %p243_p1, %s3000_s15, %s245_s20  }
   0x9   : > { %p3108_p5 = por %p256_p2, %p255_p0  ;;  %p3112_p6 = por %p262_p4, %p261_p3 }
   0xa   : > { %p2429_p7 = scmp.ge.s32.totalorder %s3004_s16, 1  ;;  %p314_p8 = scmp.lt.s32.totalorder %s3004_s16, 3 }
   0xc   : > { %p315_p9 = pnand %p2429_p7, %p314_p8 }
   0xd   : > { %p351_p10 = scmp.lt.s32.totalorder (!%p315_p9), %s3091_s17, 1  ;;  %v357_v0 = vld [vmem:[%s3629_s1] sm:$0xff] (!%p315_p9)  ;;  %vm367_vm0 = vcmask (!%p315_p9), 261120   ;;  %v3006_v10 = vmov (!%p315_p9), 0.0   ;;  %vm3007_vm1 = vmmov (!%p315_p9), 0   ;;  %v2877_v11 = vld [vmem:[%s3633_s5 + $0x8] sm:$0xff] (!%p315_p9)   ;;  %v359_v14 = vlaneseq (!%p315_p9) }
   0xe   : > { %318 = sbr.rel (%p315_p9) target bundleno = 5234 (0x1472), region = 60  ;;  %v2876_v9 = vld [vmem:[%s3633_s5] sm:$0xff] (!%p315_p9)   ;;  %2605 = vmatprep.subr.bf16.mxu1 (!%p315_p9), %v3006_v10  ;;  %2609 = vmatprep.mubr.msk.bf16.mxu1 (!%p315_p9), %vm3007_vm1, %v3006_v10  ;;  %s3008_s27 = smov (!%p315_p9), 104   ;;  %vm484_vm2 = vcmask (!%p315_p9), 64512   ;;  %v3012_v55 = vmov (!%p315_p9), -1e+30  }
   0xf   : > { %2606 = vmatpush3.bf16.msra.mxu1 (!%p315_p9), %v2876_v9  ;;  %2619 = vmatprep.subr.bf16.mxu0 (!%p315_p9), %v3006_v10  ;;  %v3147_v16 = vshrl.u32 (!%p315_p9), %v359_v14, 7  ;;  %v3153_v18 = vld [vmem:[%s3630_s2] sm:$0x3f] (!%p315_p9)  ;;  %s3009_s28 = smov (!%p315_p9), 120   ;;  %s3010_s29 = smov (!%p315_p9), 112   ;;  %v362_v54 = vand.u32 (!%p315_p9), 127, %v359_v14 }
  0x10   : > { %2607 = vmatprep.subr.bf16.mxu1 (!%p315_p9), %v3006_v10  ;;  %2621 = vmatprep.mubr.msk.bf16.mxu0 (!%p315_p9), %vm3007_vm1, %v3006_v10  ;;  %s3641_s30 = smov (!%p315_p9), 96   ;;  %vm731_vm4 = vcmask (!%p315_p9), 1043456   ;;  %s3645_s12 = smov (!%p315_p9), 96  }
  0x11   : > { %v384_v17 = vsub.s32 (!%p315_p9), 0, %v3147_v16  ;;  %v389_v19 = vsub.s32 (!%p315_p9), 1, %v3147_v16  ;;  %vm363_vm3 = vcmp.le.s32.totalorder (!%p315_p9), %v362_v54, %v3147_v16  ;;  %s2521_s20 = sshll.u32 (!%p315_p9), %s3091_s17, 7 }
  0x12   : > { %v3209_v56 = vsel (!%p315_p9), %vm363_vm3, 0.0, %v3012_v55 }
  0x13   : > { %2608 = vmatpush3.bf16.msra.mxu1 (!%p315_p9), %v2877_v11  ;;  %v385_v20 = vrot.slane (!%p315_p9), %v3153_v18, %v384_v17  ;;  %v390_v23 = vrot.slane (!%p315_p9), %v3153_v18, %v389_v19 }
  0x14   : > { %2613 = vmatprep.subr.bf16.mxu1 (!%p315_p9), %v3006_v10 }
  0x15   : > { %s352_s25 = scalar_select %p351_p10, %s3091_s17, 1 }
  0x17   : > { %s2431_s26 = sshll.u32 %s352_s25, 3 }
  0x18   : > { %s354_s11 = scalar_lea.vmem %s3628_s0, %s2431_s26 }
  0x19   : > { %v356_v1 = vld [vmem:[%s354_s11] sm:$0xff]  ;;  %s3639_s11 = smov 64  }
  0x1a   : > { %v3126_v2 = vadd.f32 %v357_v0, %v356_v1 }
  0x1c   : > { %v368_v3 = vsel %vm367_vm0, %v3126_v2, 0.0 }
  0x1d   : > { %369 = vadd.xlane.f32.xlu0 %v368_v3 }
  0xaa   : > { %v370_v4 = vpop.xlane.xlu0 %369 }
  0xab   : > { %v372_v5 = vmul.f32 0.03125, %v370_v4 }
  0xad   : > { %v373_v6 = vsub.f32 %v3126_v2, %v372_v5 }
  0xaf   : > { %v374_v7 = vmul.f32 %v373_v6, %v373_v6 }
  0xb1   : > { %v375_v8 = vsel %vm367_vm0, %v374_v7, 0.0 }
  0xb2   : > { %376 = vadd.xlane.f32.xlu0 %v375_v8 }
 0x13f   : > { %v377_v12 = vpop.xlane.xlu0 %376 }
 0x140   : > { %v378_v13 = vmul.f32 0.03125, %v377_v12 }
 0x142   : > { %v379_v15 = vadd.f32 1e-05, %v378_v13 }
 0x144   : > { %2902 = vrsqrt.f32 %v379_v15 }
 0x14e   : > { %v2903_v21 = vpop.eup %2902 }
 0x14f   : > { %v381_v22 = vmul.f32 %v2903_v21, %v373_v6 }
 0x151   : > { %v386_v24 = vmul.f32 %v385_v20, %v381_v22 }
 0x153   : > { %v391_v25 = vadd.f32 %v390_v23, %v386_v24 }
 0x155   : > { %v392_v26 = vpack.c.bf16 %v391_v25, %v391_v25 }
 0x157   : > { %2610 = vmatmul.mubr.msk.bf16.vlgmr.msra.gmra.mrb[0].mxu1 %vm367_vm0, %v392_v26 }
 0x158   : > { %2615 = vmatprep.mubr.msk.bf16.mxu1 %vm3007_vm1, %v3006_v10 }
 0x22a   : > { %v446_v27 = vpop.f32.mrb[0].mxu1 }
 0x22b   : > { %470 = vrot.lane.b32.xlu0 %v446_v27, %s3008_s27  ;;  %464 = vrot.lane.b32.xlu1 %v446_v27, %s3009_s28  ;;  %v2611_v28 = vpop.f32.mrb[1].mxu1  ;;  %v452_v31 = vmul.f32 0.17677669, %v446_v27  ;;  %v3169_v32 = vpack.c.bf16 %v446_v27, %v446_v27 }
 0x22c   : > { %v449_v29 = vpop.f32.mrb[2].mxu1 }
 0x22d   : > { %v2612_v30 = vpop.f32.mrb[3].mxu1  ;;  %v473_v41 = vpack.c.bf16 %v452_v31, %v452_v31 }
 0x22f   : > { %467 = vrot.lane.b32.xlu1 %v446_v27, %s3010_s29  ;;  %460 = vrot.lane.b32.xlu0 %v452_v31, %s3008_s27 }
 0x233   : > { %482 = vrot.lane.b32.xlu1 %v3169_v32, %s3641_s30 }
 0x237   : > { %454 = vrot.lane.b32.xlu1 %v452_v31, %s3009_s28 }
 0x29d   : > { %v465_v33 = vpop.permute.xlu1 %464  ;;  %v471_v37 = vpop.permute.xlu0 %470 }
 0x29e   : > { %v3174_v34 = vpack.c.bf16 %v465_v33, %v465_v33  ;;  %v3182_v39 = vpack.c.bf16 %v471_v37, %v471_v37 }
 0x2a0   : > { %532 = vrot.lane.b32.xlu1 %v3174_v34, %s3641_s30 }
 0x2a1   : > { %v468_v35 = vpop.permute.xlu1 %467  ;;  %v461_v50 = vpop.permute.xlu0 %460 }
 0x2a2   : > { %v3178_v36 = vpack.c.bf16 %v468_v35, %v468_v35  ;;  %v476_v53 = vpack.c.bf16 %v461_v50, %v461_v50 }
 0x2a4   : > { %581 = vrot.lane.b32.xlu1 %v3178_v36, %s3641_s30 }
 0x2a5   : > { %v483_v38 = vpop.permute.xlu1 %482 }
 0x2a6   : > { %v489_v40 = vsel %vm484_vm2, %v483_v38, 0 }
 0x2a7   : > { %2614 = vmatpush3.bf16.xpose.msra.mxu1 %v489_v40 }
 0x2a8   : > { %630 = vrot.lane.b32.xlu1 %v3182_v39, %s3641_s30  ;;  %2625 = vmatprep.subr.bf16.mxu1 %v3006_v10 }
 0x2a9   : > { %v455_v42 = vpop.permute.xlu1 %454 }
 0x2aa   : > { %v474_v47 = vpack.c.bf16 %v455_v42, %v455_v42 }
 0x2ac   : > { %457 = vrot.lane.b32.xlu1 %v452_v31, %s3010_s29 }
 0x2ae   : > { %2616 = vmatmul.mubr.msk.bf16.vlgmr.msra.gmra.mrb[4].mxu1 %vm484_vm2, %v473_v41 }
 0x2af   : > { %2627 = vmatprep.mubr.msk.bf16.mxu1 %vm3007_vm1, %v3006_v10 }
 0x312   : > { %v533_v43 = vpop.permute.xlu1 %532 }
 0x313   : > { %v538_v44 = vsel %vm484_vm2, %v533_v43, 0 }
 0x314   : > { %2620 = vmatpush3.bf16.xpose.msra.mxu0 %v538_v44 }
 0x315   : > { %2631 = vmatprep.subr.bf16.mxu0 %v3006_v10 }
 0x316   : > { %v582_v45 = vpop.permute.xlu1 %581 }
 0x317   : > { %v587_v46 = vsel %vm484_vm2, %v582_v45, 0 }
 0x318   : > { %2626 = vmatpush3.bf16.xpose.msra.mxu1 %v587_v46 }
 0x319   : > { %2637 = vmatprep.subr.bf16.mxu1 %v3006_v10 }
 0x31a   : > { %v631_v48 = vpop.permute.xlu1 %630 }
 0x31b   : > { %v636_v49 = vsel %vm484_vm2, %v631_v48, 0  ;;  %2622 = vmatmul.mubr.msk.bf16.vlgmr.msra.gmra.mrb[0].mxu0 %vm484_vm2, %v474_v47 }
 0x31c   : > { %2632 = vmatpush3.bf16.xpose.msra.mxu0 %v636_v49  ;;  %2633 = vmatprep.mubr.msk.bf16.mxu0 %vm3007_vm1, %v3006_v10 }
 0x31d   : > { %2643 = vmatprep.subr.bf16.mxu0 %v3006_v10 }
 0x31e   : > { %v458_v51 = vpop.permute.xlu1 %457 }
 0x31f   : > { %v475_v52 = vpack.c.bf16 %v458_v51, %v458_v51 }
 0x321   : > { %2628 = vmatmul.mubr.msk.bf16.vlgmr.msra.gmra.mrb[8].mxu1 %vm484_vm2, %v475_v52 }
 0x322   : > { %2639 = vmatprep.mubr.msk.bf16.mxu1 %vm3007_vm1, %v3006_v10 }
 0x323   : > { %2634 = vmatmul.mubr.msk.bf16.vlgmr.msra.gmra.mrb[4].mxu0 %vm484_vm2, %v476_v53 }
 0x324   : > { %2645 = vmatprep.mubr.msk.bf16.mxu0 %vm3007_vm1, %v3006_v10 }
 0x381   : > { %v525_v57 = vpop.f32.mrb[4].mxu1 }
 0x382   : > { %v526_v58 = vadd.f32 %v525_v57, %v3209_v56  ;;  %v2617_v59 = vpop.f32.mrb[5].mxu1 }
 0x383   : > { %v528_v60 = vpop.f32.mrb[6].mxu1 }
 0x384   : > { %v2618_v61 = vpop.f32.mrb[7].mxu1  ;;  %v678_v62 = vsel %vm484_vm2, %v526_v58, -inf }
 0x385   : > { %679 = vmax.xlane.f32.xlu1 %v678_v62 }
 0x3ee   : > { %v574_v63 = vpop.f32.mrb[0].mxu0 }
 0x3ef   : > { %v575_v0 = vadd.f32 %v574_v63, %v3209_v56  ;;  %v2623_v1 = vpop.f32.mrb[1].mxu0  ;;  %v923_v63 = vld [vmem:[%s3634_s6] sm:$0xf] }
 0x3f0   : > { %v577_v3 = vpop.f32.mrb[2].mxu0 }
 0x3f1   : > { %v2624_v4 = vpop.f32.mrb[3].mxu0  ;;  %v681_v5 = vsel %vm484_vm2, %v575_v0, -inf  ;;  %v924_v3 = vld [vmem:[%s3634_s6 + $0x4] sm:$0xf] }
 0x3f2   : > { %682 = vmax.xlane.f32.xlu0 %v681_v5 }
 0x3f4   : > { %v623_v6 = vpop.f32.mrb[8].mxu1 }
 0x3f5   : > { %v624_v7 = vadd.f32 %v623_v6, %v3209_v56  ;;  %v2629_v8 = vpop.f32.mrb[9].mxu1  ;;  %v931_v6 = vsel %vm731_vm4, %v923_v63, 0 }
 0x3f6   : > { %v626_v9 = vpop.f32.mrb[10].mxu1  ;;  %v672_v11 = vpop.f32.mrb[4].mxu0  ;;  %v977_v8 = vsel %vm731_vm4, %v924_v3, 0 }
 0x3f7   : > { %v673_v12 = vadd.f32 %v672_v11, %v3209_v56  ;;  %v2630_v13 = vpop.f32.mrb[11].mxu1  ;;  %v2635_v14 = vpop.f32.mrb[5].mxu0  ;;  %v684_v15 = vsel %vm484_vm2, %v624_v7, -inf  ;;  %v925_v9 = vld [vmem:[%s3634_s6 + $0x8] sm:$0xf] }
 0x3f8   : > { %v675_v20 = vpop.f32.mrb[6].mxu0  ;;  %685 = vmax.xlane.f32.xlu0 %v684_v15  ;;  %v1023_v14 = vsel %vm731_vm4, %v925_v9, 0  ;;  %v2878_v9 = vld [vmem:[%s3635_s7] sm:$0xff]  }
 0x3f9   : > { %v2636_v21 = vpop.f32.mrb[7].mxu0  ;;  %v687_v22 = vsel %vm484_vm2, %v673_v12, -inf }
 0x3fa   : > { %688 = vmax.xlane.f32.xlu1 %v687_v22  ;;  %v926_v21 = vld [vmem:[%s3634_s6 + $0xc] sm:$0xf] }
 0x40b   : > { %775 = vrot.lane.b32.xlu1 %v3174_v34, %s3639_s11 }
 0x40e   : > { %726 = vrot.lane.b32.xlu0 %v3169_v32, %s3639_s11 }
 0x412   : > { %v680_v23 = vpop.xlane.xlu1 %679 }
 0x413   : > { %v690_v24 = vsub.f32 %v526_v58, %v680_v23 }
 0x415   : > { %v694_v25 = vmul.f32 1.442695, %v690_v24 }
 0x417   : > { %2904 = vpow2.f32 %v694_v25  ;;  %v1069_v25 = vsel %vm731_vm4, %v926_v21, 0 }
 0x421   : > { %v2905_v26 = vpop.eup %2904 }
 0x422   : > { %v702_v27 = vsel %vm484_vm2, %v2905_v26, 0.0 }
 0x42d   : > { %703 = vadd.xlane.f32.xlu0 %v702_v27 }
 0x47f   : > { %v683_v28 = vpop.xlane.xlu0 %682 }
 0x480   : > { %v691_v29 = vsub.f32 %v575_v0, %v683_v28 }
 0x482   : > { %v696_v30 = vmul.f32 1.442695, %v691_v29 }
 0x484   : > { %2906 = vpow2.f32 %v696_v30 }
 0x485   : > { %v686_v31 = vpop.xlane.xlu0 %685 }
 0x486   : > { %v692_v33 = vsub.f32 %v624_v7, %v686_v31 }
 0x487   : > { %v689_v35 = vpop.xlane.xlu1 %688 }
 0x488   : > { %v698_v34 = vmul.f32 1.442695, %v692_v33  ;;  %v693_v37 = vsub.f32 %v673_v12, %v689_v35 }
 0x489   : > { %v727_v38 = vpop.permute.xlu0 %726 }
 0x48a   : > { %2908 = vpow2.f32 %v698_v34  ;;  %v700_v32 = vmul.f32 1.442695, %v693_v37  ;;  %v733_v40 = vsel %vm731_vm4, %v727_v38, 0 }
 0x48b   : > { %v776_v41 = vpop.permute.xlu1 %775  ;;  %2638 = vmatpush3.bf16.msra.mxu1 %v733_v40 }
 0x48c   : > { %2910 = vpow2.f32 %v700_v32  ;;  %v781_v42 = vsel %vm731_vm4, %v776_v41, 0  ;;  %2649 = vmatprep.subr.bf16.mxu1 %v3006_v10 }
 0x48d   : > { %2644 = vmatpush3.bf16.msra.mxu0 %v781_v42 }
 0x48e   : > { %v2907_v43 = vpop.eup %2906  ;;  %2655 = vmatprep.subr.bf16.mxu0 %v3006_v10 }
 0x48f   : > { %v705_v44 = vsel %vm484_vm2, %v2907_v43, 0.0 }
 0x490   : > { %706 = vadd.xlane.f32.xlu1 %v705_v44 }
 0x494   : > { %v2909_v45 = vpop.eup %2908 }
 0x495   : > { %v708_v46 = vsel %vm484_vm2, %v2909_v45, 0.0 }
 0x496   : > { %v2911_v47 = vpop.eup %2910  ;;  %709 = vadd.xlane.f32.xlu0 %v708_v46 }
 0x497   : > { %v711_v48 = vsel %vm484_vm2, %v2911_v47, 0.0 }
 0x498   : > { %712 = vadd.xlane.f32.xlu1 %v711_v48 }
 0x4a9   : > { %823 = vrot.lane.b32.xlu1 %v3178_v36, %s3639_s11 }
 0x4ac   : > { %871 = vrot.lane.b32.xlu0 %v3182_v39, %s3639_s11 }
 0x4ba   : > { %v704_v49 = vpop.xlane.xlu0 %703 }
 0x4bb   : > { %2912 = vrcp.f32 %v704_v49 }
 0x4c5   : > { %v2913_v50 = vpop.eup %2912 }
 0x4c6   : > { %v718_v51 = vmul.f32 %v2913_v50, %v2905_v26 }
 0x4c8   : > { %v722_v52 = vpack.c.bf16 %v718_v51, %v718_v51  ;;  %v1120_v51 = vsub.s32 2, %v3147_v16 }
 0x4ca   : > { %2640 = vmatmul.mubr.msk.bf16.vlgmr.msra.gmra.mrb[12].mxu1 %vm484_vm2, %v722_v52 }
 0x4cb   : > { %2651 = vmatprep.mubr.msk.bf16.mxu1 %vm3007_vm1, %v3006_v10 }
 0x51d   : > { %v707_v53 = vpop.xlane.xlu1 %706 }
 0x51e   : > { %2914 = vrcp.f32 %v707_v53 }
 0x523   : > { %v710_v54 = vpop.xlane.xlu0 %709 }
 0x524   : > { %2916 = vrcp.f32 %v710_v54 }
 0x525   : > { %v713_v55 = vpop.xlane.xlu1 %712 }
 0x526   : > { %2918 = vrcp.f32 %v713_v55 }
 0x527   : > { %v872_v39 = vpop.permute.xlu0 %871 }
 0x528   : > { %v2915_v36 = vpop.eup %2914  ;;  %v877_v61 = vsel %vm731_vm4, %v872_v39, 0 }
 0x529   : > { %v719_v57 = vmul.f32 %v2915_v36, %v2907_v43  ;;  %v824_v58 = vpop.permute.xlu1 %823 }
 0x52a   : > { %v829_v59 = vsel %vm731_vm4, %v824_v58, 0  ;;  %v1121_v58 = vrot.slane %v3153_v18, %v1120_v51 }
 0x52b   : > { %2650 = vmatpush3.bf16.msra.mxu1 %v829_v59  ;;  %v723_v60 = vpack.c.bf16 %v719_v57, %v719_v57 }
 0x52c   : > { %2661 = vmatprep.subr.bf16.mxu1 %v3006_v10 }
 0x52d   : > { %2646 = vmatmul.mubr.msk.bf16.vlgmr.msra.gmra.mrb[8].mxu0 %vm484_vm2, %v723_v60 }
 0x52e   : > { %v2917_v62 = vpop.eup %2916  ;;  %2656 = vmatpush3.bf16.msra.mxu0 %v877_v61  ;;  %2657 = vmatprep.mubr.msk.bf16.mxu0 %vm3007_vm1, %v3006_v10 }
 0x52f   : > { %v720_v0 = vmul.f32 %v2917_v62, %v2909_v45  ;;  %2667 = vmatprep.subr.bf16.mxu0 %v3006_v10 }
 0x530   : > { %v2919_v1 = vpop.eup %2918 }
 0x531   : > { %v721_v4 = vmul.f32 %v2919_v1, %v2911_v47  ;;  %v724_v5 = vpack.c.bf16 %v720_v0, %v720_v0 }
 0x533   : > { %2652 = vmatmul.mubr.msk.bf16.vlgmr.msra.gmra.mrb[16].mxu1 %vm484_vm2, %v724_v5  ;;  %v725_v7 = vpack.c.bf16 %v721_v4, %v721_v4 }
 0x534   : > { %2662 = vmatpush3.bf16.msra.mxu1 %v931_v6  ;;  %2663 = vmatprep.mubr.msk.bf16.mxu1 %vm3007_vm1, %v3006_v10 }
 0x535   : > { %2658 = vmatmul.mubr.msk.bf16.vlgmr.msra.gmra.mrb[12].mxu0 %vm484_vm2, %v725_v7  ;;  %2673 = vmatprep.subr.bf16.mxu1 %v3006_v10 }
 0x536   : > { %2668 = vmatpush3.bf16.msra.mxu0 %v977_v8  ;;  %2669 = vmatprep.mubr.msk.bf16.mxu0 %vm3007_vm1, %v3006_v10 }
 0x537   : > { %2679 = vmatprep.subr.bf16.mxu0 %v3006_v10 }
 0x59d   : > { %v769_v11 = vpop.f32.mrb[12].mxu1 }
 0x59e   : > { %v919_v12 = vpack.c.bf16 %v769_v11, %v769_v11  ;;  %v2641_v13 = vpop.f32.mrb[13].mxu1  ;;  %v2880_v11 = vld [vmem:[%s3636_s8] sm:$0xff]  }
 0x59f   : > { %v772_v15 = vpop.f32.mrb[14].mxu1  ;;  %v2882_v13 = vld [vmem:[%s3636_s8 + $0x10] sm:$0xff]  }
 0x5a0   : > { %v2642_v20 = vpop.f32.mrb[15].mxu1  ;;  %2664 = vmatmul.mubr.msk.bf16.vlgmr.msra.gmra.mrb[20].mxu1 %vm484_vm2, %v919_v12  ;;  %v2881_v12 = vld [vmem:[%s3636_s8 + $0x8] sm:$0xff]   ;;  %v2884_v15 = vld [vmem:[%s3636_s8 + $0x20] sm:$0xff]  }
 0x5a1   : > { %2674 = vmatpush3.bf16.msra.mxu1 %v1023_v14  ;;  %2675 = vmatprep.mubr.msk.bf16.mxu1 %vm3007_vm1, %v3006_v10  ;;  %v2883_v14 = vld [vmem:[%s3636_s8 + $0x18] sm:$0xff]   ;;  %v2885_v20 = vld [vmem:[%s3636_s8 + $0x28] sm:$0xff]  }
 0x5a2   : > { %2685 = vmatprep.subr.bf16.mxu1 %v3006_v10 }
 0x600   : > { %v817_v22 = vpop.f32.mrb[8].mxu0 }
 0x601   : > { %v920_v23 = vpack.c.bf16 %v817_v22, %v817_v22  ;;  %v2647_v24 = vpop.f32.mrb[9].mxu0 }
 0x602   : > { %v820_v26 = vpop.f32.mrb[10].mxu0  ;;  %v1139_v24 = vsub.s32 3, %v3147_v16 }
 0x603   : > { %v2648_v27 = vpop.f32.mrb[11].mxu0  ;;  %2670 = vmatmul.mubr.msk.bf16.vlgmr.msra.gmra.mrb[16].mxu0 %vm484_vm2, %v920_v23 }
 0x604   : > { %2680 = vmatpush3.bf16.msra.mxu0 %v1069_v25  ;;  %2681 = vmatprep.mubr.msk.bf16.mxu0 %vm3007_vm1, %v3006_v10  ;;  %v1144_v25 = vsub.s32 4, %v3147_v16  ;;  %v1140_v26 = vrot.slane %v3153_v18, %v1139_v24 }
 0x605   : > { %2693 = vmatprep.subr.bf16.mxu0 %v3006_v10 }
 0x606   : > { %v865_v28 = vpop.f32.mrb[16].mxu1 }
 0x607   : > { %v921_v29 = vpack.c.bf16 %v865_v28, %v865_v28  ;;  %v2653_v30 = vpop.f32.mrb[17].mxu1 }
 0x608   : > { %v868_v31 = vpop.f32.mrb[18].mxu1  ;;  %v913_v33 = vpop.f32.mrb[12].mxu0 }
 0x609   : > { %v922_v35 = vpack.c.bf16 %v913_v33, %v913_v33  ;;  %v2654_v34 = vpop.f32.mrb[19].mxu1  ;;  %v2659_v37 = vpop.f32.mrb[13].mxu0  ;;  %2676 = vmatmul.mubr.msk.bf16.vlgmr.msra.gmra.mrb[24].mxu1 %vm484_vm2, %v921_v29  ;;  %v1145_v29 = vrot.slane %v3153_v18, %v1144_v25 }
 0x60a   : > { %v916_v38 = vpop.f32.mrb[14].mxu0  ;;  %2689 = vmatprep.mubr.msk.bf16.mxu1 %vm3007_vm1, %v3006_v10  ;;  %2686 = vmatpush3.bf16.msra.mxu1 %v2878_v9  ;;  %v2887_v34 = vld [vmem:[%s3636_s8 + $0x38] sm:$0xff]   ;;  %v2447_v37 = vld [vmem:[%s3631_s3] ss:$0 sm:$0xff] }
 0x60b   : > { %v2660_v32 = vpop.f32.mrb[15].mxu0  ;;  %2682 = vmatmul.mubr.msk.bf16.vlgmr.msra.gmra.mrb[20].mxu0 %vm484_vm2, %v922_v35  ;;  %2687 = vmatprep.subr.bf16.mxu1 %v3006_v10  ;;  %v2886_v35 = vld [vmem:[%s3636_s8 + $0x30] sm:$0xff]  }
 0x60c   : > { %2709 = vmatprep.mubr.msk.bf16.mxu0 %vm3007_vm1, %v3006_v10  ;;  %2694 = vmatpush3.bf16.msra.mxu0 %v2880_v11 }
 0x60d   : > { %2695 = vmatprep.subr.bf16.mxu0 %v3006_v10 }
 0x610   : > { %2696 = vmatpush3.bf16.msra.mxu0 %v2881_v12 }
 0x611   : > { %2697 = vmatprep.subr.bf16.mxu0 %v3006_v10 }
 0x614   : > { %2698 = vmatpush3.bf16.msra.mxu0 %v2882_v13 }
 0x615   : > { %2699 = vmatprep.subr.bf16.mxu0 %v3006_v10 }
 0x618   : > { %2700 = vmatpush3.bf16.msra.mxu0 %v2883_v14 }
 0x619   : > { %2701 = vmatprep.subr.bf16.mxu0 %v3006_v10 }
 0x61c   : > { %2702 = vmatpush3.bf16.msra.mxu0 %v2884_v15 }
 0x61d   : > { %2703 = vmatprep.subr.bf16.mxu0 %v3006_v10 }
 0x620   : > { %2704 = vmatpush3.bf16.msra.mxu0 %v2885_v20 }
 0x621   : > { %2705 = vmatprep.subr.bf16.mxu0 %v3006_v10 }
 0x624   : > { %2706 = vmatpush3.bf16.msra.mxu0 %v2886_v35 }
 0x625   : > { %2707 = vmatprep.subr.bf16.mxu0 %v3006_v10 }
 0x628   : > { %2708 = vmatpush3.bf16.msra.mxu0 %v2887_v34 }
 0x629   : > { %2739 = vmatprep.subr.bf16.mxu0 %v3006_v10 }
 0x673   : > { %v967_v40 = vpop.f32.mrb[20].mxu1 }
 0x674   : > { %v2665_v41 = vpop.f32.mrb[21].mxu1  ;;  %v1111_v45 = vsel %vm367_vm0, %v967_v40, 0.0 }
 0x675   : > { %v970_v42 = vpop.f32.mrb[22].mxu1 }
 0x676   : > { %v2666_v43 = vpop.f32.mrb[23].mxu1 }
 0x6d6   : > { %v1013_v44 = vpop.f32.mrb[16].mxu0 }
 0x6d7   : > { %v1112_v46 = vsel %vm367_vm0, %v1013_v44, 0.0  ;;  %v2671_v47 = vpop.f32.mrb[17].mxu0 }
 0x6d8   : > { %v1113_v48 = vadd.f32 %v1112_v46, %v1111_v45  ;;  %v1016_v49 = vpop.f32.mrb[18].mxu0  ;;  %v1233_v45 = vsub.s32 5, %v3147_v16 }
 0x6d9   : > { %v2672_v50 = vpop.f32.mrb[19].mxu0 }
 0x6da   : > { %v1234_v46 = vrot.slane %v3153_v18, %v1233_v45  ;;  %v2888_v18 = vld [vmem:[%s3633_s5 + $0x10] sm:$0xff]  }
 0x6dc   : > { %v1059_v52 = vpop.f32.mrb[24].mxu1 }
 0x6dd   : > { %v1114_v53 = vsel %vm367_vm0, %v1059_v52, 0.0  ;;  %v2677_v54 = vpop.f32.mrb[25].mxu1 }
 0x6de   : > { %v1115_v55 = vadd.f32 %v1114_v53, %v1113_v48  ;;  %v1062_v36 = vpop.f32.mrb[26].mxu1  ;;  %v1105_v57 = vpop.f32.mrb[20].mxu0 }
 0x6df   : > { %v1116_v39 = vsel %vm367_vm0, %v1105_v57, 0.0  ;;  %v2678_v59 = vpop.f32.mrb[27].mxu1  ;;  %v2683_v60 = vpop.f32.mrb[21].mxu0 }
 0x6e0   : > { %v1117_v61 = vadd.f32 %v1116_v39, %v1115_v55  ;;  %v1108_v62 = vpop.f32.mrb[22].mxu0  ;;  %v2889_v59 = vld [vmem:[%s3633_s5 + $0x18] sm:$0xff]  }
 0x6e1   : > { %v2684_v63 = vpop.f32.mrb[23].mxu0 }
 0x6e2   : > { %v1122_v0 = vadd.f32 %v1121_v58, %v1117_v61  ;;  %v3376_v63 = vld [vmem:[%s3630_s2 + $0x8] sm:$0x3f] }
 0x6e4   : > { %v3292_v1 = vadd.f32 %v1122_v0, %v3126_v2  ;;  %v2879_v2 = vld [vmem:[%s3635_s7 + $0x8] sm:$0xff]   ;;  %v1344_v0 = vrot.slane %v3376_v63, %v384_v17 }
 0x6e5   : > { %2688 = vmatpush3.bf16.msra.mxu1 %v2879_v2 }
 0x6e6   : > { %v1124_v3 = vsel %vm367_vm0, %v3292_v1, 0.0  ;;  %2713 = vmatprep.subr.bf16.mxu1 %v3006_v10 }
 0x6e7   : > { %1125 = vadd.xlane.f32.xlu1 %v1124_v3  ;;  %v1349_v3 = vrot.slane %v3376_v63, %v389_v19 }
 0x774   : > { %v1126_v4 = vpop.xlane.xlu1 %1125 }
 0x775   : > { %v1127_v5 = vmul.f32 0.03125, %v1126_v4 }
 0x777   : > { %v1128_v6 = vsub.f32 %v3292_v1, %v1127_v5 }
 0x779   : > { %v1129_v7 = vmul.f32 %v1128_v6, %v1128_v6 }
 0x77b   : > { %v1130_v8 = vsel %vm367_vm0, %v1129_v7, 0.0 }
 0x77c   : > { %1131 = vadd.xlane.f32.xlu0 %v1130_v8 }
 0x809   : > { %v1132_v21 = vpop.xlane.xlu0 %1131 }
 0x80a   : > { %v1133_v22 = vmul.f32 0.03125, %v1132_v21 }
 0x80c   : > { %v1134_v23 = vadd.f32 1e-05, %v1133_v22 }
 0x80e   : > { %2920 = vrsqrt.f32 %v1134_v23 }
 0x818   : > { %v2921_v27 = vpop.eup %2920 }
 0x819   : > { %v1136_v28 = vmul.f32 %v2921_v27, %v1128_v6 }
 0x81b   : > { %v1141_v30 = vmul.f32 %v1140_v26, %v1136_v28 }
 0x81d   : > { %v1146_v31 = vadd.f32 %v1145_v29, %v1141_v30 }
 0x81f   : > { %v1147_v33 = vpack.c.bf16 %v1146_v31, %v1146_v31 }
 0x821   : > { %2690 = vmatmul.mubr.msk.bf16.vlgmr.msra.gmra.mrb[28].mxu1 %vm367_vm0, %v1147_v33 }
 0x822   : > { %2717 = vmatprep.mubr.msk.bf16.mxu1 %vm3007_vm1, %v3006_v10  ;;  %2714 = vmatpush3.bf16.msra.mxu1 %v2888_v18 }
 0x823   : > { %2715 = vmatprep.subr.bf16.mxu1 %v3006_v10 }
 0x826   : > { %2716 = vmatpush3.bf16.msra.mxu1 %v2889_v59 }
 0x827   : > { %2721 = vmatprep.subr.bf16.mxu1 %v3006_v10 }
 0x8f4   : > { %v1207_v38 = vpop.f32.mrb[28].mxu1 }
 0x8f5   : > { %v1208_v32 = vadd.f32 %v2447_v37, %v1207_v38  ;;  %v2691_v40 = vpop.f32.mrb[29].mxu1 }
 0x8f6   : > { %v1210_v41 = vpop.f32.mrb[30].mxu1 }
 0x8f7   : > { %v1213_v42 = vmax.f32 %v1208_v32, 0.0  ;;  %v2692_v43 = vpop.f32.mrb[31].mxu1 }
 0x8f9   : > { %v1214_v44 = vpack.c.bf16 %v1213_v42, %v1213_v42 }
 0x8fb   : > { %2710 = vmatmul.mubr.bf16.vlgmr.msra.gmra.mrb[24].mxu0 %v1214_v44 }
 0x8fc   : > { %2741 = vmatprep.mubr.msk.bf16.mxu0 %vm3007_vm1, %v3006_v10 }
 0x9ce   : > { %v1317_v47 = vpop.f32.mrb[24].mxu0 }
 0x9cf   : > { %v1318_v48 = vadd.f32 %v1317_v47, %v1234_v46  ;;  %v2711_v49 = vpop.f32.mrb[25].mxu0 }
 0x9d0   : > { %v1320_v50 = vpop.f32.mrb[26].mxu0 }
 0x9d1   : > { %v3359_v52 = vadd.f32 %v1318_v48, %v3292_v1  ;;  %v2712_v53 = vpop.f32.mrb[27].mxu0 }
 0x9d3   : > { %v1328_v54 = vsel %vm367_vm0, %v3359_v52, 0.0 }
 0x9d4   : > { %1329 = vadd.xlane.f32.xlu0 %v1328_v54 }
 0xa61   : > { %v1330_v55 = vpop.xlane.xlu0 %1329 }
 0xa62   : > { %v1331_v36 = vmul.f32 0.03125, %v1330_v55 }
 0xa64   : > { %v1332_v57 = vsub.f32 %v3359_v52, %v1331_v36 }
 0xa66   : > { %v1333_v58 = vmul.f32 %v1332_v57, %v1332_v57 }
 0xa68   : > { %v1334_v39 = vsel %vm367_vm0, %v1333_v58, 0.0 }
 0xa69   : > { %1335 = vadd.xlane.f32.xlu1 %v1334_v39 }
 0xaf6   : > { %v1336_v60 = vpop.xlane.xlu1 %1335 }
 0xaf7   : > { %v1337_v61 = vmul.f32 0.03125, %v1336_v60 }
 0xaf9   : > { %v1338_v62 = vadd.f32 1e-05, %v1337_v61 }
 0xafb   : > { %2922 = vrsqrt.f32 %v1338_v62 }
 0xb05   : > { %v2923_v1 = vpop.eup %2922 }
 0xb06   : > { %v1340_v4 = vmul.f32 %v2923_v1, %v1332_v57 }
 0xb08   : > { %v1345_v5 = vmul.f32 %v1344_v0, %v1340_v4 }
 0xb0a   : > { %v1350_v6 = vadd.f32 %v1349_v3, %v1345_v5 }
 0xb0c   : > { %v1351_v7 = vpack.c.bf16 %v1350_v6, %v1350_v6 }
 0xb0e   : > { %2718 = vmatmul.mubr.msk.bf16.vlgmr.msra.gmra.mrb[32].mxu1 %vm367_vm0, %v1351_v7 }
 0xb0f   : > { %2723 = vmatprep.mubr.msk.bf16.mxu1 %vm3007_vm1, %v3006_v10 }
 0xbe1   : > { %v1406_v8 = vpop.f32.mrb[32].mxu1 }
 0xbe2   : > { %1427 = vrot.lane.b32.xlu1 %v1406_v8, %s3010_s29  ;;  %1424 = vrot.lane.b32.xlu0 %v1406_v8, %s3009_s28  ;;  %v2719_v17 = vpop.f32.mrb[33].mxu1  ;;  %v3389_v11 = vpack.c.bf16 %v1406_v8, %v1406_v8  ;;  %v1412_v19 = vmul.f32 0.17677669, %v1406_v8 }
 0xbe3   : > { %v1409_v9 = vpop.f32.mrb[34].mxu1 }
 0xbe4   : > { %v2720_v2 = vpop.f32.mrb[35].mxu1  ;;  %v1433_v26 = vpack.c.bf16 %v1412_v19, %v1412_v19 }
 0xbe6   : > { %1430 = vrot.lane.b32.xlu1 %v1406_v8, %s3008_s27  ;;  %1442 = vrot.lane.b32.xlu0 %v3389_v11, %s3645_s12 }
 0xbea   : > { %1414 = vrot.lane.b32.xlu0 %v1412_v19, %s3009_s28 }
 0xc54   : > { %v1428_v12 = vpop.permute.xlu1 %1427  ;;  %v1425_v13 = vpop.permute.xlu0 %1424 }
 0xc55   : > { %v3395_v14 = vpack.c.bf16 %v1425_v13, %v1425_v13  ;;  %v3399_v21 = vpack.c.bf16 %v1428_v12, %v1428_v12 }
 0xc57   : > { %1491 = vrot.lane.b32.xlu1 %v3395_v14, %s3645_s12 }
 0xc58   : > { %v1431_v15 = vpop.permute.xlu1 %1430  ;;  %v1443_v20 = vpop.permute.xlu0 %1442 }
 0xc59   : > { %v3401_v22 = vpack.c.bf16 %v1431_v15, %v1431_v15  ;;  %v1448_v23 = vsel %vm484_vm2, %v1443_v20, 0 }
 0xc5a   : > { %2722 = vmatpush3.bf16.xpose.msra.mxu1 %v1448_v23 }
 0xc5b   : > { %1540 = vrot.lane.b32.xlu1 %v3399_v21, %s3645_s12  ;;  %1589 = vrot.lane.b32.xlu0 %v3401_v22, %s3645_s12 }
 0xc5c   : > { %2727 = vmatprep.subr.bf16.mxu1 %v3006_v10  ;;  %v1415_v27 = vpop.permute.xlu0 %1414 }
 0xc5d   : > { %v1434_v35 = vpack.c.bf16 %v1415_v27, %v1415_v27 }
 0xc5f   : > { %1417 = vrot.lane.b32.xlu1 %v1412_v19, %s3010_s29  ;;  %1420 = vrot.lane.b32.xlu0 %v1412_v19, %s3008_s27  ;;  %s3646_s27 = smov 64   ;;  %s348_s29 = sand.u32 1, %s2996_s14  }
 0xc60   : > { %s2430_s30 = sshll.u32 %s348_s29, 3  ;;  %s2354_s28 = scalar_lea.sflag [#allocation3], %s348_s29 }
 0xc61   : > { %2724 = vmatmul.mubr.msk.bf16.vlgmr.msra.gmra.mrb[36].mxu1 %vm484_vm2, %v1433_v26  ;;  %s350_s21 = scalar_lea.vmem [#allocation2], %s2430_s30  ;;  %s3014_s30 = smov [#allocation2]  }
 0xc62   : > { %2729 = vmatprep.mubr.msk.bf16.mxu1 %vm3007_vm1, %v3006_v10  ;;  %s2367_s25 = sshll.u32 %s350_s21, 4  ;;  %s2946_s11 = sshll.u32 %s3014_s30, 4  ;;  %s3588_s25 = int_to_ptr.vmem [resolvable:$true] %s2367_s25  ;;  %s2947_s11 = int_to_ptr.vmem [resolvable:$false] %s2946_s11 }
 0xc63   : > { %s2942_s17 = scalar_lea.vmem %s3588_s25, 128  ;;  %s2948_s18 = scalar_lea.vmem %s2947_s11, 256 }
 0xc64   : > { %p2943_p11 = scmp.ne.s32.totalorder %s3588_s25, %s2942_s17  ;;  %p2949_p0 = scmp.lt.s32.totalorder %s3588_s25, %s2947_s11 }
 0xc65   : > { %p2950_p1 = scmp.lt.s32.totalorder %s2948_s18, %s2942_s17 }
 0xc66   : > { %p2944_p12 = pnand %p2943_p11, %p3108_p5 }
 0xc67   : > { %p2951_p2 = por %p2950_p1, %p2949_p0 }
 0xc68   : > { %p2945_p13 = pneg %p2944_p12 }
 0xc6a   : > { %p2952_p3 = pnand %p2951_p2, %p2945_p13 }
 0xcc9   : > { %v1492_v28 = vpop.permute.xlu1 %1491 }
 0xcca   : > { %v1497_v29 = vsel %vm484_vm2, %v1492_v28, 0 }
 0xccb   : > { %2728 = vmatpush3.bf16.xpose.msra.mxu1 %v1497_v29 }
 0xccc   : > { %2733 = vmatprep.subr.bf16.mxu1 %v3006_v10 }
 0xccd   : > { %v1590_v30 = vpop.permute.xlu0 %1589  ;;  %v1541_v33 = vpop.permute.xlu1 %1540 }
 0xcce   : > { %v1595_v31 = vsel %vm484_vm2, %v1590_v30, 0  ;;  %v1546_v37 = vsel %vm484_vm2, %v1541_v33, 0 }
 0xccf   : > { %2740 = vmatpush3.bf16.xpose.msra.mxu0 %v1595_v31 }
 0xcd0   : > { %2751 = vmatprep.subr.bf16.mxu0 %v3006_v10 }
 0xcd1   : > { %v1421_v34 = vpop.permute.xlu0 %1420  ;;  %v1418_v32 = vpop.permute.xlu1 %1417 }
 0xcd2   : > { %2730 = vmatmul.mubr.msk.bf16.vlgmr.msra.gmra.mrb[40].mxu1 %vm484_vm2, %v1434_v35  ;;  %v1436_v38 = vpack.c.bf16 %v1421_v34, %v1421_v34  ;;  %v1435_v40 = vpack.c.bf16 %v1418_v32, %v1418_v32 }
 0xcd3   : > { %2734 = vmatpush3.bf16.xpose.msra.mxu1 %v1546_v37  ;;  %2735 = vmatprep.mubr.msk.bf16.mxu1 %vm3007_vm1, %v3006_v10 }
 0xcd4   : > { %2745 = vmatprep.subr.bf16.mxu1 %v3006_v10 }
 0xcd6   : > { %2742 = vmatmul.mubr.msk.bf16.vlgmr.msra.gmra.mrb[28].mxu0 %vm484_vm2, %v1436_v38 }
 0xcd7   : > { %2753 = vmatprep.mubr.msk.bf16.mxu0 %vm3007_vm1, %v3006_v10 }
 0xcda   : > { %2736 = vmatmul.mubr.msk.bf16.vlgmr.msra.gmra.mrb[44].mxu1 %vm484_vm2, %v1435_v40 }
 0xcdb   : > { %2747 = vmatprep.mubr.msk.bf16.mxu1 %vm3007_vm1, %v3006_v10 }
 0xd34   : > { %v1484_v41 = vpop.f32.mrb[36].mxu1 }
 0xd35   : > { %v1485_v42 = vadd.f32 %v1484_v41, %v3209_v56  ;;  %v2725_v43 = vpop.f32.mrb[37].mxu1 }
 0xd36   : > { %v1487_v44 = vpop.f32.mrb[38].mxu1 }
 0xd37   : > { %v2726_v46 = vpop.f32.mrb[39].mxu1  ;;  %v1637_v47 = vsel %vm484_vm2, %v1485_v42, -inf }
 0xd38   : > { %1638 = vmax.xlane.f32.xlu1 %v1637_v47 }
 0xda5   : > { %v1533_v48 = vpop.f32.mrb[40].mxu1 }
 0xda6   : > { %v1534_v49 = vadd.f32 %v1533_v48, %v3209_v56  ;;  %v2731_v50 = vpop.f32.mrb[41].mxu1 }
 0xda7   : > { %v1536_v53 = vpop.f32.mrb[42].mxu1 }
 0xda8   : > { %v2732_v54 = vpop.f32.mrb[43].mxu1  ;;  %v1640_v55 = vsel %vm484_vm2, %v1534_v49, -inf  ;;  %v2476_v53 = vld [vmem:[%s3634_s6 + $0x10] sm:$0xf] }
 0xda9   : > { %v1631_v36 = vpop.f32.mrb[28].mxu0  ;;  %1641 = vmax.xlane.f32.xlu0 %v1640_v55  ;;  %v2477_v55 = vld [vmem:[%s3634_s6 + $0x14] sm:$0xf] }
 0xdaa   : > { %v1632_v57 = vadd.f32 %v1631_v36, %v3209_v56  ;;  %v2743_v58 = vpop.f32.mrb[29].mxu0 }
 0xdab   : > { %v1634_v39 = vpop.f32.mrb[30].mxu0  ;;  %v1890_v58 = vsel %vm731_vm4, %v2476_v53, 0 }
 0xdac   : > { %v2744_v18 = vpop.f32.mrb[31].mxu0  ;;  %v1646_v59 = vsel %vm484_vm2, %v1632_v57, -inf  ;;  %v1936_v39 = vsel %vm731_vm4, %v2477_v55, 0 }
 0xdad   : > { %1647 = vmax.xlane.f32.xlu1 %v1646_v59  ;;  %v1582_v60 = vpop.f32.mrb[44].mxu1  ;;  %v2478_v18 = vld [vmem:[%s3634_s6 + $0x18] sm:$0xf] }
 0xdae   : > { %v1583_v61 = vadd.f32 %v1582_v60, %v3209_v56  ;;  %v2737_v62 = vpop.f32.mrb[45].mxu1 }
 0xdaf   : > { %v1585_v0 = vpop.f32.mrb[46].mxu1  ;;  %v1982_v62 = vsel %vm731_vm4, %v2478_v18, 0  ;;  %v2892_v18 = vld [vmem:[%s3636_s8 + $0x40] sm:$0xff]  }
 0xdb0   : > { %v2738_v1 = vpop.f32.mrb[47].mxu1  ;;  %v1643_v3 = vsel %vm484_vm2, %v1583_v61, -inf }
 0xdb1   : > { %1644 = vmax.xlane.f32.xlu0 %v1643_v3  ;;  %v2479_v3 = vld [vmem:[%s3634_s6 + $0x1c] sm:$0xf] }
 0xdbe   : > { %1733 = vrot.lane.b32.xlu1 %v3395_v14, %s3646_s27 }
 0xdc5   : > { %v1639_v4 = vpop.xlane.xlu1 %1638 }
 0xdc6   : > { %v1649_v5 = vsub.f32 %v1485_v42, %v1639_v4 }
 0xdc7   : > { %1685 = vrot.lane.b32.xlu0 %v3389_v11, %s3646_s27 }
 0xdc8   : > { %v1653_v6 = vmul.f32 1.442695, %v1649_v5 }
 0xdca   : > { %2924 = vpow2.f32 %v1653_v6 }
 0xdd4   : > { %v2925_v7 = vpop.eup %2924 }
 0xdd5   : > { %v1661_v8 = vsel %vm484_vm2, %v2925_v7, 0.0 }
 0xde6   : > { %1662 = vadd.xlane.f32.xlu0 %v1661_v8 }
 0xe36   : > { %v1642_v56 = vpop.xlane.xlu0 %1641 }
 0xe37   : > { %v1650_v17 = vsub.f32 %v1534_v49, %v1642_v56 }
 0xe39   : > { %v1655_v9 = vmul.f32 1.442695, %v1650_v17 }
 0xe3a   : > { %v1648_v2 = vpop.xlane.xlu1 %1647 }
 0xe3b   : > { %2926 = vpow2.f32 %v1655_v9  ;;  %v1652_v19 = vsub.f32 %v1632_v57, %v1648_v2 }
 0xe3d   : > { %v1659_v12 = vmul.f32 1.442695, %v1652_v19 }
 0xe3e   : > { %v1734_v13 = vpop.permute.xlu1 %1733  ;;  %v1645_v14 = vpop.xlane.xlu0 %1644 }
 0xe3f   : > { %2928 = vpow2.f32 %v1659_v12  ;;  %v1739_v11 = vsel %vm731_vm4, %v1734_v13, 0  ;;  %v1651_v15 = vsub.f32 %v1583_v61, %v1645_v14 }
 0xe40   : > { %2752 = vmatpush3.bf16.msra.mxu0 %v1739_v11 }
 0xe41   : > { %v1657_v20 = vmul.f32 1.442695, %v1651_v15  ;;  %2763 = vmatprep.subr.bf16.mxu0 %v3006_v10 }
 0xe42   : > { %v1686_v23 = vpop.permute.xlu0 %1685 }
 0xe43   : > { %2930 = vpow2.f32 %v1657_v20  ;;  %v1691_v26 = vsel %vm731_vm4, %v1686_v23, 0 }
 0xe44   : > { %2746 = vmatpush3.bf16.msra.mxu1 %v1691_v26 }
 0xe45   : > { %v2927_v27 = vpop.eup %2926  ;;  %2757 = vmatprep.subr.bf16.mxu1 %v3006_v10 }
 0xe46   : > { %v1664_v28 = vsel %vm484_vm2, %v2927_v27, 0.0 }
 0xe47   : > { %1665 = vadd.xlane.f32.xlu1 %v1664_v28 }
 0xe49   : > { %v2929_v29 = vpop.eup %2928 }
 0xe4a   : > { %v1670_v30 = vsel %vm484_vm2, %v2929_v29, 0.0 }
 0xe4b   : > { %1671 = vadd.xlane.f32.xlu1 %v1670_v30 }
 0xe4d   : > { %v2931_v31 = vpop.eup %2930 }
 0xe4e   : > { %v1667_v33 = vsel %vm484_vm2, %v2931_v31, 0.0 }
 0xe4f   : > { %1668 = vadd.xlane.f32.xlu0 %v1667_v33 }
 0xe5c   : > { %1781 = vrot.lane.b32.xlu1 %v3399_v21, %s3646_s27 }
 0xe65   : > { %1829 = vrot.lane.b32.xlu0 %v3401_v22, %s3646_s27  ;;  %s3586_s27 = scalar_lea.hbm %s3638_s10, %s2521_s20 }
 0xe73   : > { %v1663_v35 = vpop.xlane.xlu0 %1662 }
 0xe74   : > { %2932 = vrcp.f32 %v1663_v35 }
 0xe7e   : > { %v2933_v34 = vpop.eup %2932 }
 0xe7f   : > { %v1677_v37 = vmul.f32 %v2933_v34, %v2925_v7  ;;  %v2028_v7 = vsel %vm731_vm4, %v2479_v3, 0 }
 0xe81   : > { %v1681_v38 = vpack.c.bf16 %v1677_v37, %v1677_v37 }
 0xe83   : > { %2748 = vmatmul.mubr.msk.bf16.vlgmr.msra.gmra.mrb[48].mxu1 %vm484_vm2, %v1681_v38 }
 0xe84   : > { %2759 = vmatprep.mubr.msk.bf16.mxu1 %vm3007_vm1, %v3006_v10 }
 0xed4   : > { %v1666_v32 = vpop.xlane.xlu1 %1665 }
 0xed5   : > { %2934 = vrcp.f32 %v1666_v32 }
 0xed8   : > { %v1672_v40 = vpop.xlane.xlu1 %1671 }
 0xed9   : > { %2936 = vrcp.f32 %v1672_v40 }
 0xedc   : > { %v1782_v41 = vpop.permute.xlu1 %1781  ;;  %v1669_v42 = vpop.xlane.xlu0 %1668 }
 0xedd   : > { %v1787_v21 = vsel %vm731_vm4, %v1782_v41, 0  ;;  %2938 = vrcp.f32 %v1669_v42 }
 0xede   : > { %2758 = vmatpush3.bf16.msra.mxu1 %v1787_v21 }
 0xedf   : > { %v2935_v22 = vpop.eup %2934  ;;  %2769 = vmatprep.subr.bf16.mxu1 %v3006_v10 }
 0xee0   : > { %v1678_v43 = vmul.f32 %v2935_v22, %v2927_v27  ;;  %v1830_v44 = vpop.permute.xlu0 %1829  ;;  %v2080_v22 = vrot.slane %v3376_v63, %v1120_v51 }
 0xee1   : > { %v1835_v48 = vsel %vm731_vm4, %v1830_v44, 0 }
 0xee2   : > { %v1682_v46 = vpack.c.bf16 %v1678_v43, %v1678_v43 }
 0xee3   : > { %v2937_v47 = vpop.eup %2936 }
 0xee4   : > { %2754 = vmatmul.mubr.msk.bf16.vlgmr.msra.gmra.mrb[32].mxu0 %vm484_vm2, %v1682_v46  ;;  %v1680_v49 = vmul.f32 %v2937_v47, %v2929_v29 }
 0xee5   : > { %2764 = vmatpush3.bf16.msra.mxu0 %v1835_v48  ;;  %2765 = vmatprep.mubr.msk.bf16.mxu0 %vm3007_vm1, %v3006_v10 }
 0xee6   : > { %2775 = vmatprep.subr.bf16.mxu0 %v3006_v10  ;;  %v1684_v57 = vpack.c.bf16 %v1680_v49, %v1680_v49 }
 0xee7   : > { %v2939_v50 = vpop.eup %2938 }
 0xee8   : > { %v1679_v54 = vmul.f32 %v2939_v50, %v2931_v31 }
 0xeea   : > { %v1683_v36 = vpack.c.bf16 %v1679_v54, %v1679_v54 }
 0xeec   : > { %2760 = vmatmul.mubr.msk.bf16.vlgmr.msra.gmra.mrb[52].mxu1 %vm484_vm2, %v1683_v36  ;;  %2766 = vmatmul.mubr.msk.bf16.vlgmr.msra.gmra.mrb[36].mxu0 %vm484_vm2, %v1684_v57 }
 0xeed   : > { %2770 = vmatpush3.bf16.msra.mxu1 %v1890_v58  ;;  %2771 = vmatprep.mubr.msk.bf16.mxu1 %vm3007_vm1, %v3006_v10 }
 0xeee   : > { %2776 = vmatpush3.bf16.msra.mxu0 %v1936_v39  ;;  %2777 = vmatprep.mubr.msk.bf16.mxu0 %vm3007_vm1, %v3006_v10  ;;  %v2890_v39 = vld [vmem:[%s3635_s7 + $0x10] sm:$0xff]  }
 0xeef   : > { %2781 = vmatprep.subr.bf16.mxu1 %v3006_v10  ;;  %2787 = vmatprep.subr.bf16.mxu0 %v3006_v10 }
 0xf56   : > { %v1727_v59 = vpop.f32.mrb[48].mxu1 }
 0xf57   : > { %v1877_v60 = vpack.c.bf16 %v1727_v59, %v1727_v59  ;;  %v2749_v61 = vpop.f32.mrb[49].mxu1  ;;  %v2893_v59 = vld [vmem:[%s3636_s8 + $0x48] sm:$0xff]  }
 0xf58   : > { %v1730_v0 = vpop.f32.mrb[50].mxu1  ;;  %v2895_v61 = vld [vmem:[%s3636_s8 + $0x58] sm:$0xff]  }
 0xf59   : > { %v2750_v1 = vpop.f32.mrb[51].mxu1  ;;  %2772 = vmatmul.mubr.msk.bf16.vlgmr.msra.gmra.mrb[56].mxu1 %vm484_vm2, %v1877_v60  ;;  %v2894_v60 = vld [vmem:[%s3636_s8 + $0x50] sm:$0xff]   ;;  %v2897_v0 = vld [vmem:[%s3636_s8 + $0x68] sm:$0xff]  }
 0xf5a   : > { %2782 = vmatpush3.bf16.msra.mxu1 %v1982_v62  ;;  %2783 = vmatprep.mubr.msk.bf16.mxu1 %vm3007_vm1, %v3006_v10  ;;  %v2896_v62 = vld [vmem:[%s3636_s8 + $0x60] sm:$0xff]  }
 0xf5b   : > { %2793 = vmatprep.subr.bf16.mxu1 %v3006_v10 }
 0xfb7   : > { %v1775_v4 = vpop.f32.mrb[32].mxu0 }
 0xfb8   : > { %v1878_v5 = vpack.c.bf16 %v1775_v4, %v1775_v4  ;;  %v2755_v6 = vpop.f32.mrb[33].mxu0 }
 0xfb9   : > { %v1778_v8 = vpop.f32.mrb[34].mxu0 }
 0xfba   : > { %v2756_v56 = vpop.f32.mrb[35].mxu0  ;;  %2778 = vmatmul.mubr.msk.bf16.vlgmr.msra.gmra.mrb[40].mxu0 %vm484_vm2, %v1878_v5  ;;  %v2099_v5 = vrot.slane %v3376_v63, %v1139_v24  ;;  %v2104_v8 = vrot.slane %v3376_v63, %v1144_v25  ;;  %v2899_v24 = vld [vmem:[%s3636_s8 + $0x78] sm:$0xff]   ;;  %v2488_v25 = vld [vmem:[%s3631_s3 + $0x1] ss:$0 sm:$0xff] }
 0xfbb   : > { %2788 = vmatpush3.bf16.msra.mxu0 %v2028_v7  ;;  %2789 = vmatprep.mubr.msk.bf16.mxu0 %vm3007_vm1, %v3006_v10 }
 0xfbc   : > { %2801 = vmatprep.subr.bf16.mxu0 %v3006_v10 }
 0xfbf   : > { %v1823_v17 = vpop.f32.mrb[52].mxu1  ;;  %v1871_v9 = vpop.f32.mrb[36].mxu0 }
 0xfc0   : > { %v1879_v2 = vpack.c.bf16 %v1823_v17, %v1823_v17  ;;  %v1880_v19 = vpack.c.bf16 %v1871_v9, %v1871_v9  ;;  %v2761_v12 = vpop.f32.mrb[53].mxu1  ;;  %v2767_v13 = vpop.f32.mrb[37].mxu0 }
 0xfc1   : > { %v1826_v14 = vpop.f32.mrb[54].mxu1  ;;  %v1874_v11 = vpop.f32.mrb[38].mxu0 }
 0xfc2   : > { %v2762_v15 = vpop.f32.mrb[55].mxu1  ;;  %v2768_v20 = vpop.f32.mrb[39].mxu0  ;;  %2784 = vmatmul.mubr.msk.bf16.vlgmr.msra.gmra.mrb[60].mxu1 %vm484_vm2, %v1879_v2  ;;  %2790 = vmatmul.mubr.msk.bf16.vlgmr.msra.gmra.mrb[44].mxu0 %vm484_vm2, %v1880_v19  ;;  %v2898_v2 = vld [vmem:[%s3636_s8 + $0x70] sm:$0xff]  }
 0xfc3   : > { %2797 = vmatprep.mubr.msk.bf16.mxu1 %vm3007_vm1, %v3006_v10  ;;  %2817 = vmatprep.mubr.msk.bf16.mxu0 %vm3007_vm1, %v3006_v10 }
 0xfc4   : > { %2794 = vmatpush3.bf16.msra.mxu1 %v2890_v39  ;;  %2802 = vmatpush3.bf16.msra.mxu0 %v2892_v18 }
 0xfc5   : > { %2795 = vmatprep.subr.bf16.mxu1 %v3006_v10  ;;  %2803 = vmatprep.subr.bf16.mxu0 %v3006_v10 }
 0xfc8   : > { %2804 = vmatpush3.bf16.msra.mxu0 %v2893_v59 }
 0xfc9   : > { %2805 = vmatprep.subr.bf16.mxu0 %v3006_v10 }
 0xfcc   : > { %2806 = vmatpush3.bf16.msra.mxu0 %v2894_v60 }
 0xfcd   : > { %2807 = vmatprep.subr.bf16.mxu0 %v3006_v10 }
 0xfd0   : > { %2808 = vmatpush3.bf16.msra.mxu0 %v2895_v61 }
 0xfd1   : > { %2809 = vmatprep.subr.bf16.mxu0 %v3006_v10 }
 0xfd4   : > { %2810 = vmatpush3.bf16.msra.mxu0 %v2896_v62 }
 0xfd5   : > { %2811 = vmatprep.subr.bf16.mxu0 %v3006_v10 }
 0xfd8   : > { %2812 = vmatpush3.bf16.msra.mxu0 %v2897_v0 }
 0xfd9   : > { %2813 = vmatprep.subr.bf16.mxu0 %v3006_v10 }
 0xfdc   : > { %2814 = vmatpush3.bf16.msra.mxu0 %v2898_v2 }
 0xfdd   : > { %2815 = vmatprep.subr.bf16.mxu0 %v3006_v10 }
 0xfe0   : > { %2816 = vmatpush3.bf16.msra.mxu0 %v2899_v24 }
0x102c   : > { %v1926_v23 = vpop.f32.mrb[56].mxu1 }
0x102d   : > { %v2773_v26 = vpop.f32.mrb[57].mxu1  ;;  %v2070_v30 = vsel %vm367_vm0, %v1926_v23, 0.0  ;;  %v2900_v23 = vld [vmem:[%s3637_s9] sm:$0xff]  }
0x102e   : > { %v1929_v27 = vpop.f32.mrb[58].mxu1  ;;  %v2901_v26 = vld [vmem:[%s3637_s9 + $0x8] sm:$0xff]  }
0x102f   : > { %v2774_v28 = vpop.f32.mrb[59].mxu1  ;;  %v2195_v27 = vrot.slane %v3376_v63, %v1233_v45 }
0x108d   : > { %v1972_v29 = vpop.f32.mrb[40].mxu0 }
0x108e   : > { %v2071_v31 = vsel %vm367_vm0, %v1972_v29, 0.0  ;;  %v2779_v33 = vpop.f32.mrb[41].mxu0 }
0x108f   : > { %v2072_v35 = vadd.f32 %v2071_v31, %v2070_v30  ;;  %v1975_v34 = vpop.f32.mrb[42].mxu0 }
0x1090   : > { %v2780_v37 = vpop.f32.mrb[43].mxu0 }
0x1095   : > { %v2018_v38 = vpop.f32.mrb[60].mxu1  ;;  %v2064_v32 = vpop.f32.mrb[44].mxu0 }
0x1096   : > { %v2073_v40 = vsel %vm367_vm0, %v2018_v38, 0.0  ;;  %v2785_v41 = vpop.f32.mrb[61].mxu1  ;;  %v2791_v42 = vpop.f32.mrb[45].mxu0  ;;  %v2075_v46 = vsel %vm367_vm0, %v2064_v32, 0.0 }
0x1097   : > { %v2074_v21 = vadd.f32 %v2073_v40, %v2072_v35  ;;  %v2021_v43 = vpop.f32.mrb[62].mxu1  ;;  %v2067_v44 = vpop.f32.mrb[46].mxu0 }
0x1098   : > { %v2786_v47 = vpop.f32.mrb[63].mxu1  ;;  %v2792_v48 = vpop.f32.mrb[47].mxu0 }
0x1099   : > { %v2076_v49 = vadd.f32 %v2075_v46, %v2074_v21 }
0x109b   : > { %v2081_v50 = vadd.f32 %v2080_v22, %v2076_v49 }
0x109d   : > { %v3509_v53 = vadd.f32 %v2081_v50, %v3359_v52  ;;  %v2891_v52 = vld [vmem:[%s3635_s7 + $0x18] sm:$0xff]  }
0x109e   : > { %2796 = vmatpush3.bf16.msra.mxu1 %v2891_v52 }
0x109f   : > { %v2083_v54 = vsel %vm367_vm0, %v3509_v53, 0.0  ;;  %2821 = vmatprep.subr.bf16.mxu1 %v3006_v10 }
0x10a0   : > { %2084 = vadd.xlane.f32.xlu1 %v2083_v54 }
0x112d   : > { %v2085_v55 = vpop.xlane.xlu1 %2084 }
0x112e   : > { %v2086_v36 = vmul.f32 0.03125, %v2085_v55 }
0x1130   : > { %v2087_v57 = vsub.f32 %v3509_v53, %v2086_v36 }
0x1132   : > { %v2088_v51 = vmul.f32 %v2087_v57, %v2087_v57 }
0x1134   : > { %v2089_v58 = vsel %vm367_vm0, %v2088_v51, 0.0 }
0x1135   : > { %2090 = vadd.xlane.f32.xlu0 %v2089_v58 }
0x11c2   : > { %v2091_v1 = vpop.xlane.xlu0 %2090 }
0x11c3   : > { %v2092_v3 = vmul.f32 0.03125, %v2091_v1 }
0x11c5   : > { %v2093_v4 = vadd.f32 1e-05, %v2092_v3 }
0x11c7   : > { %2940 = vrsqrt.f32 %v2093_v4 }
0x11d1   : > { %v2941_v6 = vpop.eup %2940 }
0x11d2   : > { %v2095_v7 = vmul.f32 %v2941_v6, %v2087_v57 }
0x11d4   : > { %v2100_v56 = vmul.f32 %v2099_v5, %v2095_v7 }
0x11d6   : > { %v2105_v17 = vadd.f32 %v2104_v8, %v2100_v56 }
0x11d8   : > { %v2106_v9 = vpack.c.bf16 %v2105_v17, %v2105_v17 }
0x11da   : > { %2798 = vmatmul.mubr.msk.bf16.vlgmr.msra.gmra.mrb[64].mxu1 %vm367_vm0, %v2106_v9 }
0x11db   : > { %2825 = vmatprep.mubr.msk.bf16.mxu1 %vm3007_vm1, %v3006_v10  ;;  %2822 = vmatpush3.bf16.msra.mxu1 %v2900_v23 }
0x11dc   : > { %2823 = vmatprep.subr.bf16.mxu1 %v3006_v10  ;;  %v2516_v10 = vld [vmem:[%s3632_s4] ss:$0 sm:$0xff] }
0x11df   : > { %2824 = vmatpush3.bf16.msra.mxu1 %v2901_v26 }
0x12ad   : > { %v2167_v19 = vpop.f32.mrb[64].mxu1 }
0x12ae   : > { %v2168_v12 = vadd.f32 %v2488_v25, %v2167_v19  ;;  %v2799_v13 = vpop.f32.mrb[65].mxu1 }
0x12af   : > { %v2170_v14 = vpop.f32.mrb[66].mxu1 }
0x12b0   : > { %v2173_v11 = vmax.f32 %v2168_v12, 0.0  ;;  %v2800_v15 = vpop.f32.mrb[67].mxu1 }
0x12b2   : > { %v2174_v20 = vpack.c.bf16 %v2173_v11, %v2173_v11 }
0x12b4   : > { %2818 = vmatmul.mubr.bf16.vlgmr.msra.gmra.mrb[48].mxu0 %v2174_v20 }
0x1387   : > { %v2278_v28 = vpop.f32.mrb[48].mxu0 }
0x1388   : > { %v2279_v29 = vadd.f32 %v2278_v28, %v2195_v27  ;;  %v2819_v30 = vpop.f32.mrb[49].mxu0 }
0x1389   : > { %v2281_v31 = vpop.f32.mrb[50].mxu0 }
0x138a   : > { %v2284_v33 = vadd.f32 %v2279_v29, %v3509_v53  ;;  %v2820_v35 = vpop.f32.mrb[51].mxu0 }
0x138c   : > { %v2285_v34 = vpack.c.bf16 %v2284_v33, %v2284_v33 }
0x138e   : > { %2826 = vmatmul.mubr.msk.bf16.vlgmr.msra.gmra.mrb[68].mxu1 %vm367_vm0, %v2285_v34 }
0x1461   : > { %v2346_v16 = vpop.f32.mrb[68].mxu1 }
0x1462   : > { %v2347_v45 = vadd.f32 %v2516_v10, %v2346_v16  ;;  %v2827_v63 = vpop.f32.mrb[69].mxu1 }
0x1463   : > { %v2349_v37 = vpop.f32.mrb[70].mxu1 }
0x1464   : > { %2352 = vst [vmem:[%s350_s21] sm:$0xff] %v2347_v45  ;;  %v2828_v38 = vpop.f32.mrb[71].mxu1 }
0x1465   : > { %2955 = shalt.err (!%p2952_p3)
}
0x1466   : > { %s2956_s29 = scalar_lea.hbm %s3586_s27, 128  ;;  %s2960_s26 = scalar_lea.hbm %s3638_s10, 256 }
0x1467   : > { %p2957_p4 = scmp.ne.s32.totalorder %s3586_s27, %s2956_s29  ;;  %p2961_p9 = scmp.lt.u32.totalorder %s3586_s27, %s3638_s10 }
0x1468   : > { %p2962_p10 = scmp.lt.u32.totalorder %s2960_s26, %s2956_s29  ;;  %p2964_p12 = scmp.lt.u32.totalorder %s2956_s29, %s3586_s27 }
0x1469   : > { %p2958_p7 = pnand %p2957_p4, %p3108_p5 }
0x146a   : > { %p2963_p11 = por %p2962_p10, %p2961_p9 }
0x146b   : > { %p2959_p8 = pneg %p2958_p7 }
0x146c   : > { %p2965_p13 = por %p2964_p12, %p2963_p11 }
0x146e   : > { %p2966_p0 = pnand %p2965_p13, %p2959_p8 }
0x1470   : > { %2969 = shalt.err (!%p2966_p0)
}
0x1471   : > { %2829 = dma.vmem_to_hbm [thread:$0]  (%p3108_p5), %s3588_s25, 128, %s3586_s27, %s2354_s28  }
0x1472 PF: > { %p2835_p1 = scmp.ge.s32.totalorder %s3004_s16, 2  ;;  %s2379_s17 = sand.u32 1, %s2992_s13  }
0x1473   : > { %s2380_s11 = scalar_lea.sflag [#allocation3], %s2379_s17 }
0x1474   : > { %p2832_p2 = pnand %p2835_p1, %p3112_p6 }
0x1476   : > { %2987 = dma.done.wait (!%p2832_p2), %s2380_s11, 128  }
0x1477   : > { %2989 = vsyncadd (!%p2832_p2), %s2380_s11, 4294967168  ;;  %p20_p3 = scmp.ge.s32.totalorder %s3095_s19, 4   ;;  %s3647_s13 = smov %s2996_s14 }
0x1478   : > { %s3648_s14 = smov %s3000_s15  ;;  %s3649_s15 = smov %s3106_s22 }
0x1479   : > { %s3650_s16 = smov %s3095_s19  ;;  %22 = sbr.rel (!%p20_p3) target bundleno = 3 (0x3), region = 101 }
0x1480   :  { %2385 = vsyncpa [#allocation3], 1 }
0x1481   :  { %2387 = vsyncpa [#allocation3 + $0x1], 1 }

</bundles_post_ra>
